<compile_context>
chip_gen: v5e
topology: v5e:2x2
jax: 0.10.0
libtpu: 0.0.40
codegen_flags: <defaults>
</compile_context>

<pallas_src>
import functools

import jax
import jax.numpy as jnp
from jax.experimental import pallas as pl
from jax.experimental.pallas import tpu as pltpu

NUM_CLASS = 10
NUM_SAMPLE = 1000
EPS = 1e-6
DECODING_TIME = 1.0
NORMALISE = True
RETURN_PRED = True

_SEG = 16        # classes padded to 16 sublanes (2 full sublane tiles) per batch element
_NEG = -1e30     # pad-class rows: never win the per-sample max on real samples
_POS = 1e30      # pad-sample columns: always vote for pad class row C (sliced off)


def _round_up(x, m):
    return ((x + m - 1) // m) * m


def _vote_kernel(sp_ref, l_ref, out_ref, *, blk, seg):
    """One grid step = blk batch elements.

    sp_ref  : (k_pad, s_pad)        sp^T + ones(bias) row + pad-sample flag row (bf16, shared)
    l_ref   : (blk*seg, k_pad)      packed [L | u*T | flag] blocks, classes padded to seg rows
    out_ref : (blk, seg)            per-class vote counts (dense lane store)
    """
    # Single lane-dense MXU matmul for the whole batch block, f32 accumulate:
    #   t[b*seg + c, s] = samples_b[s, c]
    t = jnp.dot(l_ref[...], sp_ref[...], preferred_element_type=jnp.float32)
    s_pad = t.shape[-1]

    # (blk*seg, s_pad) -> (blk, seg, s_pad): seg is 2 full sublane tiles, layout-preserving.
    tb = t.reshape(blk, seg, s_pad)
    m = jnp.max(tb, axis=1, keepdims=True)                         # per-sample max over classes

    # First-max tie-break (matches torch.argmax first-occurrence; robust to bf16 ties).
    cls = jax.lax.broadcasted_iota(jnp.int32, tb.shape, 1).astype(jnp.float32)
    winner = jnp.min(jnp.where(tb == m, cls, jnp.float32(seg)), axis=1, keepdims=True)
    votes = jnp.where(cls == winner, 1.0, 0.0)                     # (blk, seg, s_pad)

    out_ref[...] = jnp.sum(votes, axis=-1)                         # (blk, seg) dense store


def gaussian_sampling_predict(sample_points, u, cov, *, eps=EPS,
                              decoding_time=DECODING_TIME,
                              normalise=NORMALISE, return_pred=RETURN_PRED):
    """JAX wrapper matching GaussianSamplingPredict.forward((u, cov))."""
    B, C = u.shape
    S = sample_points.shape[0]
    assert sample_points.shape == (S, C)

    seg = _SEG
    assert C < seg, "need at least one pad class row for the pad-sample flag trick"
    k_aug = C + 2                            # [L | bias | pad-sample flag]
    k_pad = _round_up(k_aug, 8)
    s_pad = _round_up(S, 128)

    # Batch-block selection: as few fat grid steps as possible (blk multiple of 8),
    # capped so f32 intermediates stay comfortably inside scoped VMEM on every chip.
    if B <= 8:
        blk = 8
    else:
        blk = min(_round_up(pl.cdiv(B, 2), 8), 64)
    grid = pl.cdiv(B, blk)
    b_pad = grid * blk

    # ---- glue (plain JAX): tiny per-batch Cholesky + operand packing --------------
    f32 = jnp.float32
    cov_t = cov.astype(f32) * decoding_time + eps * jnp.eye(C, dtype=f32)[None]
    L = jnp.linalg.cholesky(cov_t)                                   # (B, C, C)
    bias = u.astype(f32) * decoding_time                             # (B, C)

    L_aug = jnp.zeros((b_pad, seg, k_pad), dtype=f32)
    L_aug = L_aug.at[:B, :C, :C].set(L)
    L_aug = L_aug.at[:B, :C, C].set(bias)                # bias column (rides the ones row)
    L_aug = L_aug.at[:, C:, C].set(f32(_NEG))            # pad-class rows lose on real samples
    L_aug = L_aug.at[:, C, C + 1].set(f32(_POS))         # pad samples vote for class row C
    L_pack = L_aug.reshape(b_pad * seg, k_pad).astype(jnp.bfloat16)

    sp_aug = jnp.zeros((k_pad, s_pad), dtype=f32)
    sp_aug = sp_aug.at[:C, :S].set(sample_points.astype(f32).T)
    sp_aug = sp_aug.at[C, :S].set(1.0)                   # ones row -> mean-shift bias
    sp_aug = sp_aug.at[C + 1, S:].set(1.0)               # pad-sample flag row
    sp_aug = sp_aug.astype(jnp.bfloat16)

    # ---- cost / VMEM hints ---------------------------------------------------------
    t_bytes = blk * seg * s_pad * 4
    vmem_limit = int(min(48 * 2**20, max(16 * 2**20, 12 * t_bytes)))
    flops = 2 * b_pad * seg * k_pad * s_pad
    bytes_accessed = int(L_pack.size * 2 + sp_aug.size * 2 * grid + b_pad * seg * 4)

    # ---- Pallas kernel: sampling matmul + per-sample argmax + vote counting --------
    counts = pl.pallas_call(
        functools.partial(_vote_kernel, blk=blk, seg=seg),
        out_shape=jax.ShapeDtypeStruct((b_pad, seg), jnp.float32),
        grid=(grid,),
        in_specs=[
            pl.BlockSpec((k_pad, s_pad), lambda g: (0, 0)),          # shared sp_aug
            pl.BlockSpec((blk * seg, k_pad), lambda g: (g, 0)),      # packed [L | bias | flag]
        ],
        out_specs=pl.BlockSpec((blk, seg), lambda g: (g, 0)),        # dense lane tile
        compiler_params=pltpu.CompilerParams(
            dimension_semantics=("parallel",),
            vmem_limit_bytes=vmem_limit),
        cost_estimate=pl.CostEstimate(
            flops=flops, transcendentals=0, bytes_accessed=bytes_accessed),
    )(sp_aug, L_pack)

    # ---- wrapper epilogue on the tiny (B, C) result ---------------------------------
    counts = counts[:B, :C]                                           # drop pad rows/classes
    probs = counts * (1.0 / S) if normalise else counts
    if return_pred:
        return jnp.argmax(probs, axis=-1).astype(jnp.int32)           # (B,)
    return probs                                                      # (B, C)


if __name__ == "__main__":
    key = jax.random.PRNGKey(0)
    k_sp, k_u, k_a = jax.random.split(key, 3)

    B = 2
    # Deterministic "buffer" init mirroring torch.randn(num_sample, num_class).
    sample_points = jax.random.normal(k_sp, (NUM_SAMPLE, NUM_CLASS), dtype=jnp.float32)

    # Example forward inputs: mean u (B, C) and a PSD covariance cov (B, C, C).
    u = jax.random.normal(k_u, (B, NUM_CLASS), dtype=jnp.float32)
    A = jax.random.normal(k_a, (B, NUM_CLASS, NUM_CLASS), dtype=jnp.float32)
    cov = jnp.matmul(A, jnp.swapaxes(A, -1, -2)) / NUM_CLASS \
        + 0.1 * jnp.eye(NUM_CLASS, dtype=jnp.float32)[None]

    pred = gaussian_sampling_predict(sample_points, u, cov)
    jax.block_until_ready(pred)
    assert pred.shape == (B,) and pred.dtype == jnp.int32

    probs = gaussian_sampling_predict(sample_points, u, cov, return_pred=False)
    jax.block_until_ready(probs)
    assert probs.shape == (B, NUM_CLASS)
    # Each valid sample casts exactly one vote (first-max tie-break), so probs sum to 1.
    assert jnp.allclose(jnp.sum(probs, axis=-1), 1.0)

    print("KERNEL_OK")
</pallas_src>

<mosaic_0001>
module attributes {stable_mosaic.version = 11 : i64} {
  func.func @_vote_kernel(%arg0: i32, %arg1: memref<16x1024xbf16, #tpu.memory_space<vmem>>, %arg2: memref<128x16xbf16, #tpu.memory_space<vmem>>, %arg3: memref<8x16xf32, #tpu.memory_space<vmem>>) attributes {dimension_semantics = [#tpu.dimension_semantics<parallel>], iteration_bounds = array<i64: 1>, scalar_prefetch = 0 : i64, scratch_operands = 0 : i64, tpu.core_type = #tpu.core_type<tc>, window_params = [{pipeline_mode = #tpu.pipeline_mode<synchronous>, transform_indices = @transform_0, window_bounds = array<i64: 16, 1024>}, {transform_indices = @transform_1, window_bounds = array<i64: 128, 16>}, {transform_indices = @transform_2, window_bounds = array<i64: 8, 16>}]} {
    %c0 = arith.constant 0 : index
    %c0_0 = arith.constant 0 : index
    %0 = vector.load %arg2[%c0, %c0_0] : memref<128x16xbf16, #tpu.memory_space<vmem>>, vector<128x16xbf16>
    %c0_1 = arith.constant 0 : index
    %c0_2 = arith.constant 0 : index
    %1 = vector.load %arg1[%c0_1, %c0_2] : memref<16x1024xbf16, #tpu.memory_space<vmem>>, vector<16x1024xbf16>
    %cst = arith.constant dense<0.000000e+00> : vector<128x1024xf32>
    %2 = tpu.matmul %0, %1, %cst {dimension_numbers = #tpu.dot_dimension_numbers<[1], [0], [0], [1], [0, 0, 1, 1], [], []>} : vector<128x16xbf16>, vector<16x1024xbf16>, vector<128x1024xf32> -> vector<128x1024xf32>
    %3 = vector.shape_cast %2 : vector<128x1024xf32> to vector<8x16x1024xf32>
    %cst_3 = arith.constant dense<0xFF800000> : vector<8x1024xf32>
    %4 = vector.multi_reduction <maximumf>, %3, %cst_3 [1] : vector<8x16x1024xf32> to vector<8x1024xf32>
    %5 = vector.shape_cast %4 : vector<8x1024xf32> to vector<8x1x1024xf32>
    %6 = tpu.iota {dimensions = array<i32: 1>} : vector<8x16x1024xi32>
    %7 = arith.sitofp %6 : vector<8x16x1024xi32> to vector<8x16x1024xf32>
    %8 = vector.broadcast %5 : vector<8x1x1024xf32> to vector<8x16x1024xf32>
    %9 = arith.cmpf oeq, %3, %8 : vector<8x16x1024xf32>
    %cst_4 = arith.constant 1.600000e+01 : f32
    %10 = vector.broadcast %cst_4 : f32 to vector<8x16x1024xf32>
    %11 = arith.select %9, %7, %10 : vector<8x16x1024xi1>, vector<8x16x1024xf32>
    %cst_5 = arith.constant dense<0x7F800000> : vector<8x1024xf32>
    %12 = vector.multi_reduction <minimumf>, %11, %cst_5 [1] : vector<8x16x1024xf32> to vector<8x1024xf32>
    %13 = vector.shape_cast %12 : vector<8x1024xf32> to vector<8x1x1024xf32>
    %14 = vector.broadcast %13 : vector<8x1x1024xf32> to vector<8x16x1024xf32>
    %15 = arith.cmpf oeq, %7, %14 : vector<8x16x1024xf32>
    %cst_6 = arith.constant 1.000000e+00 : f32
    %cst_7 = arith.constant 0.000000e+00 : f32
    %16 = vector.broadcast %cst_6 : f32 to vector<8x16x1024xf32>
    %17 = vector.broadcast %cst_7 : f32 to vector<8x16x1024xf32>
    %18 = arith.select %15, %16, %17 : vector<8x16x1024xi1>, vector<8x16x1024xf32>
    %cst_8 = arith.constant dense<0.000000e+00> : vector<8x16xf32>
    %19 = vector.multi_reduction <add>, %18, %cst_8 [2] : vector<8x16x1024xf32> to vector<8x16xf32>
    %c0_9 = arith.constant 0 : index
    %c0_10 = arith.constant 0 : index
    %20 = vector.load %arg3[%c0_9, %c0_10] : memref<8x16xf32, #tpu.memory_space<vmem>>, vector<8x16xf32>
    tpu.vector_store %arg3[%c0_9, %c0_10], %19 {strides = array<i32>} : memref<8x16xf32, #tpu.memory_space<vmem>>, vector<8x16xf32>,
    return
  }
  func.func @transform_0(%arg0: i32) -> (i32, i32) {
    %c0_i32 = arith.constant 0 : i32
    %c0_i32_0 = arith.constant 0 : i32
    %c0_i32_1 = arith.constant 0 : i32
    return %c0_i32, %c0_i32_0 : i32, i32
  }
  func.func @transform_1(%arg0: i32) -> (i32, i32) {
    %c0_i32 = arith.constant 0 : i32
    %c0_i32_0 = arith.constant 0 : i32
    return %arg0, %c0_i32 : i32, i32
  }
  func.func @transform_2(%arg0: i32) -> (i32, i32) {
    %c0_i32 = arith.constant 0 : i32
    %c0_i32_0 = arith.constant 0 : i32
    return %arg0, %c0_i32 : i32, i32
  }
}

</mosaic_0001>

<bundles_post_ra>
// kernel: tpu_custom_call.1
= control target key start
LH: loop header
LB: loop body
LE: loop exit
PB: predicated region body
PF: predicated region fallthrough
CT: control target
= control target key end

     0   :  { %vm117_vm0 = vcmask 130048   ;;  %s4221_s0 = inlined_call_operand.vmem [shape: bf16[16,1024], index: 0, kind: input, shape index: {}]   ;;  %s4222_s1 = inlined_call_operand.vmem [shape: bf16[128,16], index: 1, kind: input, shape index: {}]   ;;  %s4223_s2 = inlined_call_operand.hbm [shape: f32[8,16], index: 2, kind: output, shape index: {}]  }
   0x1   :  { %v2201_v0 = vld [vmem:[%s4221_s0] sm:$0xf]  ;;  %v2303_v2 = vld [vmem:[%s4221_s0 + $0x4] sm:$0xf]  ;;  %v2209_v5 = vld [vmem:[%s4221_s0 + $0x8] sm:$0xf] }
   0x2   :  { %v2307_v1 = vld [vmem:[%s4221_s0 + $0x1c] sm:$0xf0]  ;;  %v2203_v4 = vld [vmem:[%s4221_s0 + $0x20] sm:$0xf0]  ;;  %v2308_v6 = vld [vmem:[%s4221_s0 + $0x24] sm:$0xf0] }
   0x3   :  { %v2202_v3 = vor.u32 %v2307_v1, %v2201_v0  ;;  %v2206_v7 = vor.u32 %v2303_v2, %v2203_v4  ;;  %v2210_v8 = vor.u32 %v2308_v6, %v2209_v5  ;;  %v2304_v9 = vld [vmem:[%s4221_s0 + $0xc] sm:$0xf]  ;;  %v2383_v11 = vld [vmem:[%s4222_s1] sm:$0xff]  ;;  %v2225_v13 = vld [vmem:[%s4221_s0 + $0x18] sm:$0xf] }
   0x4   :  { %v2211_v10 = vld [vmem:[%s4221_s0 + $0x28] sm:$0xf0]  ;;  %v2310_v14 = vld [vmem:[%s4221_s0 + $0x34] sm:$0xf0]  ;;  %v2217_v15 = vld [vmem:[%s4221_s0 + $0x10] sm:$0xf] }
   0x5   :  { %149 = vmatpush.bf16.msra.mxu0 %v2202_v3  ;;  %v2214_v12 = vor.u32 %v2304_v9, %v2211_v10  ;;  %198 = vmatpush.bf16.msra.mxu1 %v2206_v7  ;;  %v2226_v16 = vor.u32 %v2310_v14, %v2225_v13  ;;  %v2309_v17 = vld [vmem:[%s4221_s0 + $0x2c] sm:$0xf0]  ;;  %v2306_v18 = vld [vmem:[%s4221_s0 + $0x1c] sm:$0xf]  ;;  %v2305_v22 = vld [vmem:[%s4221_s0 + $0x14] sm:$0xf] }
   0x6   :  { %247 = vmatpush.bf16.msra.mxu2 %v2210_v8  ;;  %v2227_v19 = vld [vmem:[%s4221_s0 + $0x38] sm:$0xf0]  ;;  %v2218_v20 = vor.u32 %v2309_v17, %v2217_v15  ;;  %v2219_v23 = vld [vmem:[%s4221_s0 + $0x30] sm:$0xf0] }
   0x7   :  { %296 = vmatpush.bf16.msra.mxu3 %v2214_v12  ;;  %v2230_v21 = vor.u32 %v2306_v18, %v2227_v19  ;;  %v2222_v24 = vor.u32 %v2305_v22, %v2219_v23 }
   0x8   :  { %2231 = vmatmul.msk.bf16.vlgmr.msra.gmra.mxu0 %vm117_vm0, %v2383_v11 }
   0xa   :  { %443 = vmatpush.bf16.msrb.mxu2 %v2226_v16 }
   0xb   :  { %7 = vsyncpa [#allocation3], 0  ;;  %2239 = vmatmul.msk.bf16.vlgmr.msra.gmra.mxu1 %vm117_vm0, %v2383_v11  ;;  %2247 = vmatmul.msk.bf16.vlgmr.msra.gmra.mxu2 %vm117_vm0, %v2383_v11  ;;  %v2420_v25 = vld [vmem:[%s4222_s1 + $0x8] sm:$0xff]  ;;  %v2433_v26 = vld [vmem:[%s4222_s1 + $0x10] sm:$0xff]  ;;  %v4224_v37 = vlaneseq  ;;  %s2158_s3 = sshll.u32 %s4223_s2, 4  ;;  %s2159_s3 = int_to_ptr.hbm [resolvable:$true] %s2158_s3 }
   0xc   :  { %2255 = vmatmul.msk.bf16.vlgmr.msra.gmra.mxu3 %vm117_vm0, %v2383_v11  ;;  %345 = vmatpush.bf16.msrb.mxu0 %v2218_v20  ;;  %v2446_v27 = vld [vmem:[%s4222_s1 + $0x18] sm:$0xff]  ;;  %v2459_v28 = vld [vmem:[%s4222_s1 + $0x20] sm:$0xff]  ;;  %v2472_v29 = vld [vmem:[%s4222_s1 + $0x28] sm:$0xff] }
   0xd   :  { %492 = vmatpush.bf16.msrb.mxu3 %v2230_v21  ;;  %394 = vmatpush.bf16.msrb.mxu1 %v2222_v24  ;;  %v2485_v30 = vld [vmem:[%s4222_s1 + $0x30] sm:$0xff]  ;;  %v2498_v31 = vld [vmem:[%s4222_s1 + $0x38] sm:$0xff]  ;;  %v983_v42 = vshrl.u32 %v4224_v37, 7  ;;  %s2340_s1 = smov [#allocation2]  }
   0xe   :  { %s2156_s28 = sshll.u32 %s2340_s1, 4  ;;  %s2157_s28 = int_to_ptr.vmem [resolvable:$true] %s2156_s28 }
   0xf   :  { %v984_v48 = vadd.s32 8, %v983_v42  ;;  %v2529_v60 = vcvt.s32.f32 %v983_v42 }
  0x11   :  { %v2531_v61 = vcvt.s32.f32 %v984_v48 }
  0x18   :  { %2232 = vmatmul.msk.bf16.gmra.mxu0 %vm117_vm0, %v2420_v25 }
  0x1b   :  { %2240 = vmatmul.msk.bf16.gmra.mxu1 %vm117_vm0, %v2420_v25  ;;  %2248 = vmatmul.msk.bf16.gmra.mxu2 %vm117_vm0, %v2420_v25 }
  0x1c   :  { %2256 = vmatmul.msk.bf16.gmra.mxu3 %vm117_vm0, %v2420_v25 }
  0x28   :  { %2233 = vmatmul.msk.bf16.gmra.mxu0 %vm117_vm0, %v2433_v26 }
  0x2b   :  { %2241 = vmatmul.msk.bf16.gmra.mxu1 %vm117_vm0, %v2433_v26  ;;  %2249 = vmatmul.msk.bf16.gmra.mxu2 %vm117_vm0, %v2433_v26 }
  0x2c   :  { %2257 = vmatmul.msk.bf16.gmra.mxu3 %vm117_vm0, %v2433_v26 }
  0x38   :  { %2234 = vmatmul.msk.bf16.gmra.mxu0 %vm117_vm0, %v2446_v27 }
  0x3b   :  { %2242 = vmatmul.msk.bf16.gmra.mxu1 %vm117_vm0, %v2446_v27  ;;  %2250 = vmatmul.msk.bf16.gmra.mxu2 %vm117_vm0, %v2446_v27 }
  0x3c   :  { %2258 = vmatmul.msk.bf16.gmra.mxu3 %vm117_vm0, %v2446_v27 }
  0x48   :  { %2235 = vmatmul.msk.bf16.gmra.mxu0 %vm117_vm0, %v2459_v28 }
  0x4b   :  { %2243 = vmatmul.msk.bf16.gmra.mxu1 %vm117_vm0, %v2459_v28  ;;  %2251 = vmatmul.msk.bf16.gmra.mxu2 %vm117_vm0, %v2459_v28 }
  0x4c   :  { %2259 = vmatmul.msk.bf16.gmra.mxu3 %vm117_vm0, %v2459_v28 }
  0x58   :  { %2236 = vmatmul.msk.bf16.gmra.mxu0 %vm117_vm0, %v2472_v29 }
  0x5b   :  { %2244 = vmatmul.msk.bf16.gmra.mxu1 %vm117_vm0, %v2472_v29  ;;  %2252 = vmatmul.msk.bf16.gmra.mxu2 %vm117_vm0, %v2472_v29 }
  0x5c   :  { %2260 = vmatmul.msk.bf16.gmra.mxu3 %vm117_vm0, %v2472_v29 }
  0x68   :  { %2237 = vmatmul.msk.bf16.gmra.mxu0 %vm117_vm0, %v2485_v30 }
  0x6b   :  { %2245 = vmatmul.msk.bf16.gmra.mxu1 %vm117_vm0, %v2485_v30  ;;  %2253 = vmatmul.msk.bf16.gmra.mxu2 %vm117_vm0, %v2485_v30 }
  0x6c   :  { %2261 = vmatmul.msk.bf16.gmra.mxu3 %vm117_vm0, %v2485_v30 }
  0x78   :  { %2238 = vmatmul.msk.bf16.gmra.mxu0 %vm117_vm0, %v2498_v31 }
  0x7b   :  { %2246 = vmatmul.msk.bf16.gmra.mxu1 %vm117_vm0, %v2498_v31  ;;  %2254 = vmatmul.msk.bf16.gmra.mxu2 %vm117_vm0, %v2498_v31 }
  0x7c   :  { %2262 = vmatmul.msk.bf16.gmra.mxu3 %vm117_vm0, %v2498_v31 }
  0x85   :  { %v151_v32 = vpop.f32.mrf.mxu0 }
  0x88   :  { %v200_v33 = vpop.f32.mrf.mxu1  ;;  %2263 = vmatmul.msk.bf16.vlgmr.msrb.gmra.mxu0 %vm117_vm0, %v2383_v11 }
  0x8b   :  { %2271 = vmatmul.msk.bf16.vlgmr.msrb.gmra.mxu1 %vm117_vm0, %v2383_v11  ;;  %2279 = vmatmul.msk.bf16.vlgmr.msrb.gmra.mxu2 %vm117_vm0, %v2383_v11 }
  0x8c   :  { %2287 = vmatmul.msk.bf16.vlgmr.msrb.gmra.mxu3 %vm117_vm0, %v2383_v11 }
  0x8d   :  { %v153_v36 = vpop.f32.mrf.mxu0 }
  0x8e   :  { %v2516_v34 = vpop.f32.mrf.mxu2  ;;  %v534_v38 = vmax.f32 %v151_v32, %v153_v36 }
  0x8f   :  { %v2518_v35 = vpop.f32.mrf.mxu3 }
  0x90   :  { %v202_v39 = vpop.f32.mrf.mxu1  ;;  %v535_v41 = vrot.slane %v534_v38, 4 }
  0x91   :  { %v541_v40 = vmax.f32 %v200_v33, %v202_v39 }
  0x92   :  { %v536_v44 = vmax.f32 %v534_v38, %v535_v41 }
  0x93   :  { %v542_v43 = vrot.slane %v541_v40, 4 }
  0x94   :  { %v537_v46 = vrot.slane %v536_v44, 2 }
  0x95   :  { %v543_v45 = vmax.f32 %v541_v40, %v542_v43  ;;  %v2522_v52 = vpop.f32.mrf.mxu0 }
  0x96   :  { %v251_v47 = vpop.f32.mrf.mxu2  ;;  %v538_v53 = vmax.f32 %v536_v44, %v537_v46 }
  0x97   :  { %v544_v49 = vrot.slane %v543_v45, 2  ;;  %v548_v50 = vmax.f32 %v2516_v34, %v251_v47  ;;  %v300_v51 = vpop.f32.mrf.mxu3 }
  0x98   :  { %v555_v54 = vmax.f32 %v2518_v35, %v300_v51  ;;  %v2525_v55 = vpop.f32.mrf.mxu1  ;;  %v539_v58 = vrot.slane %v538_v53, 1  ;;  %2264 = vmatmul.msk.bf16.gmra.mxu0 %vm117_vm0, %v2420_v25 }
  0x99   :  { %v545_v56 = vmax.f32 %v543_v45, %v544_v49  ;;  %v549_v57 = vrot.slane %v548_v50, 4 }
  0x9a   :  { %v556_v59 = vrot.slane %v555_v54, 4  ;;  %v540_v0 = vmax.f32 %v538_v53, %v539_v58 }
  0x9b   :  { %v546_v62 = vrot.slane %v545_v56, 1  ;;  %v550_v63 = vmax.f32 %v548_v50, %v549_v57  ;;  %2272 = vmatmul.msk.bf16.gmra.mxu1 %vm117_vm0, %v2420_v25  ;;  %2280 = vmatmul.msk.bf16.gmra.mxu2 %vm117_vm0, %v2420_v25 }
  0x9c   :  { %v557_v1 = vmax.f32 %v555_v54, %v556_v59  ;;  %2288 = vmatmul.msk.bf16.gmra.mxu3 %vm117_vm0, %v2420_v25  ;;  %vm987_vm1 = vcmp.eq.f32.partialorder %v151_v32, %v540_v0  ;;  %vm995_vm2 = vcmp.eq.f32.partialorder %v153_v36, %v540_v0 }
  0x9d   :  { %v547_v2 = vmax.f32 %v545_v56, %v546_v62  ;;  %v551_v3 = vrot.slane %v550_v63, 2  ;;  %v1115_v6 = vsel %vm987_vm1, %v2529_v60, 16.0  ;;  %v1123_v7 = vsel %vm995_vm2, %v2531_v61, 16.0  ;;  %v158_v9 = vpop.f32.mrf.mxu0 }
  0x9e   :  { %v558_v4 = vrot.slane %v557_v1, 2  ;;  %v2539_v5 = vpop.f32.mrf.mxu2  ;;  %v2545_v10 = vmin.f32 %v1115_v6, %v1123_v7  ;;  %v590_v17 = vmax.f32 %v2522_v52, %v158_v9 }
  0x9f   :  { %vm988_vm3 = vcmp.eq.f32.partialorder %v200_v33, %v547_v2  ;;  %vm996_vm4 = vcmp.eq.f32.partialorder %v202_v39, %v547_v2  ;;  %v2543_v8 = vpop.f32.mrf.mxu3  ;;  %v552_v13 = vmax.f32 %v550_v63, %v551_v3 }
  0xa0   :  { %v1116_v11 = vsel %vm988_vm3, %v2529_v60, 16.0  ;;  %v1124_v12 = vsel %vm996_vm4, %v2531_v61, 16.0  ;;  %v207_v14 = vpop.f32.mrf.mxu1  ;;  %v559_v16 = vmax.f32 %v557_v1, %v558_v4  ;;  %v591_v21 = vrot.slane %v590_v17, 4 }
  0xa1   :  { %v2549_v15 = vmin.f32 %v1116_v11, %v1124_v12  ;;  %v597_v18 = vmax.f32 %v2525_v55, %v207_v14  ;;  %v553_v19 = vrot.slane %v552_v13, 1 }
  0xa2   :  { %v560_v20 = vrot.slane %v559_v16, 1  ;;  %v592_v25 = vmax.f32 %v590_v17, %v591_v21 }
  0xa3   :  { %v598_v22 = vrot.slane %v597_v18, 4  ;;  %v554_v23 = vmax.f32 %v552_v13, %v553_v19 }
  0xa4   :  { %v561_v24 = vmax.f32 %v559_v16, %v560_v20  ;;  %v593_v44 = vrot.slane %v592_v25, 2  ;;  %v1251_v16 = vrot.slane %v2549_v15, 4 }
  0xa5   :  { %v599_v32 = vmax.f32 %v597_v18, %v598_v22  ;;  %vm989_vm5 = vcmp.eq.f32.partialorder %v2516_v34, %v554_v23  ;;  %vm997_vm6 = vcmp.eq.f32.partialorder %v251_v47, %v554_v23  ;;  %v2561_v40 = vpop.f32.mrf.mxu0 }
  0xa6   :  { %v2554_v33 = vpop.f32.mrf.mxu2  ;;  %v1117_v36 = vsel %vm989_vm5, %v2529_v60, 16.0  ;;  %v1125_v38 = vsel %vm997_vm6, %v2531_v61, 16.0  ;;  %vm990_vm7 = vcmp.eq.f32.partialorder %v2518_v35, %v561_v24  ;;  %vm998_vm8 = vcmp.eq.f32.partialorder %v300_v51, %v561_v24 }
  0xa7   :  { %v2559_v39 = vpop.f32.mrf.mxu3  ;;  %v2563_v41 = vmin.f32 %v1117_v36, %v1125_v38  ;;  %v1118_v42 = vsel %vm990_vm7, %v2529_v60, 16.0  ;;  %v1126_v34 = vsel %vm998_vm8, %v2531_v61, 16.0  ;;  %v600_v45 = vrot.slane %v599_v32, 2 }
  0xa8   :  { %v2566_v43 = vpop.f32.mrf.mxu1  ;;  %v2569_v46 = vmin.f32 %v1118_v42, %v1126_v34  ;;  %v604_v35 = vmax.f32 %v2539_v5, %v2554_v33  ;;  %2265 = vmatmul.msk.bf16.gmra.mxu0 %vm117_vm0, %v2433_v26  ;;  %v594_v47 = vmax.f32 %v592_v25, %v593_v44  ;;  %v611_v49 = vmax.f32 %v2543_v8, %v2559_v39 }
  0xa9   :  { %v601_v48 = vmax.f32 %v599_v32, %v600_v45  ;;  %v1252_v34 = vmin.f32 %v2549_v15, %v1251_v16 }
  0xaa   :  { %v605_v50 = vrot.slane %v604_v35, 4  ;;  %v595_v51 = vrot.slane %v594_v47, 1  ;;  %v612_v54 = vrot.slane %v611_v49, 4 }
  0xab   :  { %2273 = vmatmul.msk.bf16.gmra.mxu1 %vm117_vm0, %v2433_v26  ;;  %2281 = vmatmul.msk.bf16.gmra.mxu2 %vm117_vm0, %v2433_v26  ;;  %v602_v53 = vrot.slane %v601_v48, 1 }
  0xac   :  { %2289 = vmatmul.msk.bf16.gmra.mxu3 %vm117_vm0, %v2433_v26  ;;  %v596_v57 = vmax.f32 %v594_v47, %v595_v51  ;;  %v606_v63 = vmax.f32 %v604_v35, %v605_v50  ;;  %v613_v0 = vmax.f32 %v611_v49, %v612_v54  ;;  %v1244_v26 = vrot.slane %v2545_v10, 4 }
  0xad   :  { %v603_v58 = vmax.f32 %v601_v48, %v602_v53  ;;  %v2587_v62 = vpop.f32.mrf.mxu0  ;;  %v1265_v51 = vrot.slane %v2569_v46, 4 }
  0xae   :  { %v2583_v56 = vpop.f32.mrf.mxu2  ;;  %vm1003_vm9 = vcmp.eq.f32.partialorder %v2522_v52, %v596_v57  ;;  %vm1011_vm10 = vcmp.eq.f32.partialorder %v158_v9, %v596_v57  ;;  %v607_v11 = vrot.slane %v606_v63, 2  ;;  %v614_v52 = vrot.slane %v613_v0, 2 }
  0xaf   :  { %v2585_v59 = vpop.f32.mrf.mxu3  ;;  %vm1004_vm11 = vcmp.eq.f32.partialorder %v2525_v55, %v603_v58  ;;  %vm1012_vm12 = vcmp.eq.f32.partialorder %v207_v14, %v603_v58  ;;  %v1131_v2 = vsel %vm1003_vm9, %v2529_v60, 16.0  ;;  %v1139_v3 = vsel %vm1011_vm10, %v2531_v61, 16.0 }
  0xb0   :  { %v2589_v1 = vpop.f32.mrf.mxu1  ;;  %v2596_v4 = vmin.f32 %v1131_v2, %v1139_v3  ;;  %v1132_v6 = vsel %vm1004_vm11, %v2529_v60, 16.0  ;;  %v1140_v7 = vsel %vm1012_vm12, %v2531_v61, 16.0  ;;  %v608_v9 = vmax.f32 %v606_v63, %v607_v11 }
  0xb1   :  { %v2600_v12 = vmin.f32 %v1132_v6, %v1140_v7  ;;  %v646_v55 = vmax.f32 %v2561_v40, %v2587_v62  ;;  %v653_v13 = vmax.f32 %v2566_v43, %v2589_v1  ;;  %v1245_v14 = vmin.f32 %v2545_v10, %v1244_v26 }
  0xb2   :  { %v615_v17 = vmax.f32 %v613_v0, %v614_v52  ;;  %v609_v19 = vrot.slane %v608_v9, 1  ;;  %v1253_v6 = vrot.slane %v1252_v34, 2  ;;  %v1266_v52 = vmin.f32 %v2569_v46, %v1265_v51 }
  0xb3   :  { %v647_v20 = vrot.slane %v646_v55, 4  ;;  %v654_v21 = vrot.slane %v653_v13, 4  ;;  %v1246_v42 = vrot.slane %v1245_v14, 2  ;;  %v1307_v16 = vrot.slane %v2600_v12, 4 }
  0xb4   :  { %v616_v24 = vrot.slane %v615_v17, 1  ;;  %v610_v36 = vmax.f32 %v608_v9, %v609_v19 }
  0xb5   :  { %v2612_v23 = vpop.f32.mrf.mxu0  ;;  %v648_v38 = vmax.f32 %v646_v55, %v647_v20  ;;  %v655_v45 = vmax.f32 %v653_v13, %v654_v21  ;;  %v2652_v11 = vmin.f32 %v1245_v14, %v1246_v42  ;;  %v1300_v13 = vrot.slane %v2596_v4, 4 }
  0xb6   :  { %v2608_v18 = vpop.f32.mrf.mxu2  ;;  %v617_v44 = vmax.f32 %v615_v17, %v616_v24  ;;  %vm1005_vm13 = vcmp.eq.f32.partialorder %v2539_v5, %v610_v36  ;;  %vm1013_vm14 = vcmp.eq.f32.partialorder %v2554_v33, %v610_v36  ;;  %v1258_v5 = vrot.slane %v2563_v41, 4 }
  0xb7   :  { %v2610_v22 = vpop.f32.mrf.mxu3  ;;  %v660_v25 = vmax.f32 %v2583_v56, %v2608_v18  ;;  %v649_v35 = vrot.slane %v648_v38, 2  ;;  %v1133_v48 = vsel %vm1005_vm13, %v2529_v60, 16.0  ;;  %v1141_v15 = vsel %vm1013_vm14, %v2531_v61, 16.0 }
  0xb8   :  { %v667_v32 = vmax.f32 %v2585_v59, %v2610_v22  ;;  %v2618_v10 = vpop.f32.mrf.mxu1  ;;  %2266 = vmatmul.msk.bf16.gmra.mxu0 %vm117_vm0, %v2446_v27  ;;  %vm1006_vm15 = vcmp.eq.f32.partialorder %v2543_v8, %v617_v44  ;;  %v2635_v33 = vmin.f32 %v1133_v48, %v1141_v15  ;;  %vm1014_vm1 = vcmp.eq.f32.partialorder %v2559_v39, %v617_v44 }
  0xb9   :  { %v661_v47 = vrot.slane %v660_v25, 4  ;;  %v1134_v50 = vsel %vm1006_vm15, %v2529_v60, 16.0  ;;  %v1142_v53 = vsel %vm1014_vm1, %v2531_v61, 16.0  ;;  %v650_v54 = vmax.f32 %v648_v38, %v649_v35 }
  0xba   :  { %v668_v49 = vrot.slane %v667_v32, 4  ;;  %v656_v57 = vrot.slane %v655_v45, 2  ;;  %v2643_v8 = vmin.f32 %v1134_v50, %v1142_v53  ;;  %v1259_v7 = vmin.f32 %v2563_v41, %v1258_v5 }
  0xbb   :  { %2274 = vmatmul.msk.bf16.gmra.mxu1 %vm117_vm0, %v2446_v27  ;;  %2282 = vmatmul.msk.bf16.gmra.mxu2 %vm117_vm0, %v2446_v27  ;;  %v662_v63 = vmax.f32 %v660_v25, %v661_v47  ;;  %v651_v26 = vrot.slane %v650_v54, 1  ;;  %v2661_v14 = vmin.f32 %v1252_v34, %v1253_v6  ;;  %v1301_v36 = vmin.f32 %v2596_v4, %v1300_v13 }
  0xbc   :  { %2290 = vmatmul.msk.bf16.gmra.mxu3 %vm117_vm0, %v2446_v27  ;;  %v657_v2 = vmax.f32 %v655_v45, %v656_v57  ;;  %v669_v39 = vmax.f32 %v667_v32, %v668_v49  ;;  %v1260_v21 = vrot.slane %v1259_v7, 2  ;;  %v1308_v45 = vmin.f32 %v2600_v12, %v1307_v16 }
  0xbd   :  { %v2647_v0 = vpop.f32.mrf.mxu0  ;;  %v652_v9 = vmax.f32 %v650_v54, %v651_v26  ;;  %v663_v17 = vrot.slane %v662_v63, 2  ;;  %v1248_v48 = vrot.slane %v2652_v11, 1  ;;  %v1255_v49 = vrot.slane %v2661_v14, 1 }
  0xbe   :  { %v2641_v58 = vpop.f32.mrf.mxu2  ;;  %v658_v55 = vrot.slane %v657_v2, 1  ;;  %v670_v19 = vrot.slane %v669_v39, 2  ;;  %v702_v41 = vmax.f32 %v2612_v23, %v2647_v0  ;;  %v1261_v5 = vmin.f32 %v1259_v7, %v1260_v21 }
  0xbf   :  { %v2645_v27 = vpop.f32.mrf.mxu3  ;;  %vm1019_vm2 = vcmp.eq.f32.partialorder %v2561_v40, %v652_v9  ;;  %vm1027_vm3 = vcmp.eq.f32.partialorder %v2587_v62, %v652_v9  ;;  %v664_v40 = vmax.f32 %v662_v63, %v663_v17  ;;  %v1267_v62 = vrot.slane %v1266_v52, 2 }
  0xc0   :  { %v2649_v3 = vpop.f32.mrf.mxu1  ;;  %v659_v20 = vmax.f32 %v657_v2, %v658_v55  ;;  %v1147_v46 = vsel %vm1019_vm2, %v2529_v60, 16.0  ;;  %v1155_v24 = vsel %vm1027_vm3, %v2531_v61, 16.0  ;;  %v703_v15 = vrot.slane %v702_v41, 4 }
  0xc1   :  { %v2665_v25 = vmin.f32 %v1147_v46, %v1155_v24  ;;  %v709_v4 = vmax.f32 %v2618_v10, %v2649_v3  ;;  %v1268_v12 = vmin.f32 %v1266_v52, %v1267_v62  ;;  %v1302_v63 = vrot.slane %v1301_v36, 2 }
  0xc2   :  { %vm1020_vm4 = vcmp.eq.f32.partialorder %v2566_v43, %v659_v20  ;;  %vm1028_vm5 = vcmp.eq.f32.partialorder %v2589_v1, %v659_v20  ;;  %v665_v43 = vrot.slane %v664_v40, 1  ;;  %v671_v1 = vmax.f32 %v669_v39, %v670_v19 }
  0xc3   :  { %v1148_v38 = vsel %vm1020_vm4, %v2529_v60, 16.0  ;;  %v1156_v42 = vsel %vm1028_vm5, %v2531_v61, 16.0  ;;  %v704_v53 = vmax.f32 %v702_v41, %v703_v15  ;;  %v710_v54 = vrot.slane %v709_v4, 4 }
  0xc4   :  { %v2679_v35 = vmin.f32 %v1148_v38, %v1156_v42  ;;  %v666_v50 = vmax.f32 %v664_v40, %v665_v43  ;;  %v672_v51 = vrot.slane %v671_v1, 1  ;;  %v1309_v26 = vrot.slane %v1308_v45, 2 }
  0xc5   :  { %v2676_v44 = vpop.f32.mrf.mxu0  ;;  %v705_v7 = vrot.slane %v704_v53, 2  ;;  %v1314_v52 = vrot.slane %v2635_v33, 4  ;;  %v1321_v9 = vrot.slane %v2643_v8, 4  ;;  %v711_v13 = vmax.f32 %v709_v4, %v710_v54 }
  0xc6   :  { %v2669_v32 = vpop.f32.mrf.mxu2  ;;  %vm1021_vm6 = vcmp.eq.f32.partialorder %v2583_v56, %v666_v50  ;;  %vm1029_vm7 = vcmp.eq.f32.partialorder %v2608_v18, %v666_v50  ;;  %v673_v6 = vmax.f32 %v671_v1, %v672_v51  ;;  %v1262_v17 = vrot.slane %v1261_v5, 1 }
  0xc7   :  { %v2674_v34 = vpop.f32.mrf.mxu3  ;;  %v716_v57 = vmax.f32 %v2641_v58, %v2669_v32  ;;  %v1149_v2 = vsel %vm1021_vm6, %v2529_v60, 16.0  ;;  %v1157_v39 = vsel %vm1029_vm7, %v2531_v61, 16.0  ;;  %v1269_v19 = vrot.slane %v1268_v12, 1 }
  0xc8   :  { %v2681_v47 = vpop.f32.mrf.mxu1  ;;  %2267 = vmatmul.msk.bf16.gmra.mxu0 %vm117_vm0, %v2459_v28  ;;  %v2703_v55 = vmin.f32 %v1149_v2, %v1157_v39  ;;  %vm1022_vm8 = vcmp.eq.f32.partialorder %v2585_v59, %v673_v6  ;;  %vm1030_vm9 = vcmp.eq.f32.partialorder %v2610_v22, %v673_v6  ;;  %v1303_v20 = vmin.f32 %v1301_v36, %v1302_v63 }
  0xc9   :  { %v717_v56 = vrot.slane %v716_v57, 4  ;;  %v1150_v41 = vsel %vm1022_vm8, %v2529_v60, 16.0  ;;  %v1158_v21 = vsel %vm1030_vm9, %v2531_v61, 16.0  ;;  %v712_v24 = vrot.slane %v711_v13, 2 }
  0xca   :  { %v2715_v38 = vmin.f32 %v1308_v45, %v1309_v26  ;;  %v1315_v59 = vmin.f32 %v2635_v33, %v1314_v52  ;;  %v1322_v22 = vmin.f32 %v2643_v8, %v1321_v9  ;;  %v2719_v42 = vmin.f32 %v1150_v41, %v1158_v21 }
  0xcb   :  { %2275 = vmatmul.msk.bf16.gmra.mxu1 %vm117_vm0, %v2459_v28  ;;  %2283 = vmatmul.msk.bf16.gmra.mxu2 %vm117_vm0, %v2459_v28  ;;  %v718_v40 = vmax.f32 %v716_v57, %v717_v56  ;;  %v713_v1 = vmax.f32 %v711_v13, %v712_v24  ;;  %v723_v4 = vmax.f32 %v2645_v27, %v2674_v34  ;;  %v1304_v8 = vrot.slane %v1303_v20, 1 }
  0xcc   :  { %2291 = vmatmul.msk.bf16.gmra.mxu3 %vm117_vm0, %v2459_v28  ;;  %v706_v28 = vmax.f32 %v704_v53, %v705_v7  ;;  %v2726_v50 = vmin.f32 %v2652_v11, %v1248_v48  ;;  %v2729_v45 = vmin.f32 %v2661_v14, %v1255_v49  ;;  %v2731_v51 = vmin.f32 %v1261_v5, %v1262_v17 }
  0xcd   :  { %v2713_v62 = vpop.f32.mrf.mxu0  ;;  %v719_v15 = vrot.slane %v718_v40, 2  ;;  %v2733_v33 = vmin.f32 %v1268_v12, %v1269_v19  ;;  %v714_v53 = vrot.slane %v713_v1, 1  ;;  %v1311_v54 = vrot.slane %v2715_v38, 1 }
  0xce   :  { %v2705_v16 = vpop.f32.mrf.mxu2  ;;  %v707_v46 = vrot.slane %v706_v28, 1  ;;  %v1316_v57 = vrot.slane %v1315_v59, 2  ;;  %v1356_v63 = vrot.slane %v2665_v25, 4  ;;  %v1323_v14 = vrot.slane %v1322_v22, 2 }
  0xcf   :  { %v2709_v18 = vpop.f32.mrf.mxu3  ;;  %v715_v5 = vmax.f32 %v713_v1, %v714_v53  ;;  %v720_v12 = vmax.f32 %v718_v40, %v719_v15  ;;  %v1363_v26 = vrot.slane %v2679_v35, 4  ;;  %v758_v2 = vmax.f32 %v2676_v44, %v2713_v62 }
  0xd0   :  { %v2721_v43 = vpop.f32.mrf.mxu1  ;;  %v708_v36 = vmax.f32 %v706_v28, %v707_v46  ;;  %v1370_v6 = vrot.slane %v2703_v55, 4  ;;  %v1317_v52 = vmin.f32 %v1315_v59, %v1316_v57  ;;  %v1357_v9 = vmin.f32 %v2665_v25, %v1356_v63 }
  0xd1   :  { %vm1036_vm12 = vcmp.eq.f32.partialorder %v2618_v10, %v715_v5  ;;  %vm1044_vm13 = vcmp.eq.f32.partialorder %v2649_v3, %v715_v5  ;;  %v721_v7 = vrot.slane %v720_v12, 1  ;;  %v1324_v56 = vmin.f32 %v1322_v22, %v1323_v14 }
  0xd2   :  { %vm1035_vm10 = vcmp.eq.f32.partialorder %v2612_v23, %v708_v36  ;;  %vm1043_vm11 = vcmp.eq.f32.partialorder %v2647_v0, %v708_v36  ;;  %v724_v0 = vrot.slane %v723_v4, 4  ;;  %v1164_v13 = vsel %vm1036_vm12, %v2529_v60, 16.0 }
  0xd3   :  { %v1163_v11 = vsel %vm1035_vm10, %v2529_v60, 16.0  ;;  %v1171_v49 = vsel %vm1043_vm11, %v2531_v61, 16.0  ;;  %v1172_v28 = vsel %vm1044_vm13, %v2531_v61, 16.0  ;;  %v722_v19 = vmax.f32 %v720_v12, %v721_v7 }
  0xd4   :  { %v2744_v23 = vmin.f32 %v1163_v11, %v1171_v49  ;;  %v2758_v17 = vmin.f32 %v1164_v13, %v1172_v28  ;;  %v725_v41 = vmax.f32 %v723_v4, %v724_v0  ;;  %v1364_v10 = vmin.f32 %v2679_v35, %v1363_v26 }
  0xd5   :  { %v2760_v21 = vpop.f32.mrf.mxu0  ;;  %v759_v3 = vrot.slane %v758_v2, 4  ;;  %v765_v25 = vmax.f32 %v2681_v47, %v2721_v43  ;;  %v2775_v40 = vmin.f32 %v1303_v20, %v1304_v8  ;;  %v1371_v59 = vmin.f32 %v2703_v55, %v1370_v6 }
  0xd6   :  { %v2740_v48 = vpop.f32.mrf.mxu2  ;;  %vm1037_vm14 = vcmp.eq.f32.partialorder %v2641_v58, %v722_v19  ;;  %vm1045_vm15 = vcmp.eq.f32.partialorder %v2669_v32, %v722_v19  ;;  %v1358_v35 = vrot.slane %v1357_v9, 2  ;;  %v726_v1 = vrot.slane %v725_v41, 2 }
  0xd7   :  { %v2748_v39 = vpop.f32.mrf.mxu3  ;;  %v772_v46 = vmax.f32 %v2705_v16, %v2740_v48  ;;  %v1165_v22 = vsel %vm1037_vm14, %v2529_v60, 16.0  ;;  %v1173_v36 = vsel %vm1045_vm15, %v2531_v61, 16.0  ;;  %v1318_v15 = vrot.slane %v1317_v52, 1 }
  0xd8   :  { %2268 = vmatmul.msk.bf16.gmra.mxu0 %vm117_vm0, %v2472_v29  ;;  %v2769_v24 = vpop.f32.mrf.mxu1  ;;  %v1325_v4 = vrot.slane %v1324_v56, 1  ;;  %v2782_v53 = vmin.f32 %v1165_v22, %v1173_v36  ;;  %v760_v57 = vmax.f32 %v758_v2, %v759_v3  ;;  %v727_v20 = vmax.f32 %v725_v41, %v726_v1 }
  0xd9   :  { %v766_v8 = vrot.slane %v765_v25, 4  ;;  %v773_v63 = vrot.slane %v772_v46, 4  ;;  %v1372_v58 = vrot.slane %v1371_v59, 2  ;;  %v1377_v32 = vrot.slane %v2719_v42, 4 }
  0xda   :  { %v761_v11 = vrot.slane %v760_v57, 2  ;;  %v779_v14 = vmax.f32 %v2709_v18, %v2748_v39  ;;  %v2789_v49 = vmin.f32 %v1357_v9, %v1358_v35  ;;  %v728_v5 = vrot.slane %v727_v20, 1 }
  0xdb   :  { %2276 = vmatmul.msk.bf16.gmra.mxu1 %vm117_vm0, %v2472_v29  ;;  %2284 = vmatmul.msk.bf16.gmra.mxu2 %vm117_vm0, %v2472_v29  ;;  %v767_v12 = vmax.f32 %v765_v25, %v766_v8  ;;  %v774_v26 = vmax.f32 %v772_v46, %v773_v63  ;;  %v2794_v2 = vmin.f32 %v2715_v38, %v1311_v54 }
  0xdc   :  { %2292 = vmatmul.msk.bf16.gmra.mxu3 %vm117_vm0, %v2472_v29  ;;  %v1365_v29 = vrot.slane %v1364_v10, 2  ;;  %v2796_v6 = vmin.f32 %v1317_v52, %v1318_v15  ;;  %v762_v7 = vmax.f32 %v760_v57, %v761_v11  ;;  %v780_v13 = vrot.slane %v779_v14, 4 }
  0xdd   :  { %v729_v19 = vmax.f32 %v727_v20, %v728_v5  ;;  %v768_v41 = vrot.slane %v767_v12, 2  ;;  %v775_v3 = vrot.slane %v774_v26, 2  ;;  %v2800_v22 = vmin.f32 %v1371_v59, %v1372_v58  ;;  %v2805_v35 = vpop.f32.mrf.mxu0 }
  0xde   :  { %v2784_v55 = vpop.f32.mrf.mxu2  ;;  %v2798_v28 = vmin.f32 %v1364_v10, %v1365_v29  ;;  %v2803_v9 = vmin.f32 %v2719_v42, %v1377_v32  ;;  %v763_v25 = vrot.slane %v762_v7, 1  ;;  %v781_v46 = vmax.f32 %v779_v14, %v780_v13 }
  0xdf   :  { %v2791_v0 = vpop.f32.mrf.mxu3  ;;  %v2807_v38 = vmin.f32 %v1324_v56, %v1325_v4  ;;  %v1360_v54 = vrot.slane %v2789_v49, 1  ;;  %vm1038_vm1 = vcmp.eq.f32.partialorder %v2645_v27, %v729_v19  ;;  %vm1046_vm2 = vcmp.eq.f32.partialorder %v2674_v34, %v729_v19 }
  0xe0   :  { %v2812_v52 = vpop.f32.mrf.mxu1  ;;  %v1412_v10 = vrot.slane %v2744_v23, 4  ;;  %v1419_v59 = vrot.slane %v2758_v17, 4  ;;  %v1166_v42 = vsel %vm1038_vm1, %v2529_v60, 16.0  ;;  %v1174_v36 = vsel %vm1046_vm2, %v2531_v61, 16.0 }
  0xe1   :  { %v2818_v1 = vmin.f32 %v1166_v42, %v1174_v36  ;;  %v764_v56 = vmax.f32 %v762_v7, %v763_v25  ;;  %v769_v15 = vmax.f32 %v767_v12, %v768_v41  ;;  %v776_v4 = vmax.f32 %v774_v26, %v775_v3 }
  0xe2   :  { %v1367_v57 = vrot.slane %v2798_v28, 1  ;;  %v1379_v34 = vrot.slane %v2803_v9, 2  ;;  %v782_v29 = vrot.slane %v781_v46, 2  ;;  %v1426_v20 = vrot.slane %v2782_v53, 4 }
  0xe3   :  { %vm1051_vm3 = vcmp.eq.f32.partialorder %v2676_v44, %v764_v56  ;;  %vm1059_vm4 = vcmp.eq.f32.partialorder %v2713_v62, %v764_v56  ;;  %v770_v8 = vrot.slane %v769_v15, 1  ;;  %v1413_v58 = vmin.f32 %v2744_v23, %v1412_v10 }
  0xe4   :  { %v1179_v32 = vsel %vm1051_vm3, %v2529_v60, 16.0  ;;  %v1187_v11 = vsel %vm1059_vm4, %v2531_v61, 16.0  ;;  %v777_v14 = vrot.slane %v776_v4, 1  ;;  %v1420_v44 = vmin.f32 %v2758_v17, %v1419_v59 }
  0xe5   :  { %v1467_v5 = vmin.f32 %v1179_v32, %v1187_v11  ;;  %v771_v62 = vmax.f32 %v769_v15, %v770_v8  ;;  %v783_v12 = vmax.f32 %v781_v46, %v782_v29  ;;  %v814_v23 = vmax.f32 %v2760_v21, %v2805_v35  ;;  %v2855_v46 = vpop.f32.mrf.mxu0 }
  0xe6   :  { %v2826_v63 = vpop.f32.mrf.mxu2  ;;  %v778_v7 = vmax.f32 %v776_v4, %v777_v14  ;;  %v821_v13 = vmax.f32 %v2769_v24, %v2812_v52  ;;  %v1427_v17 = vmin.f32 %v2782_v53, %v1426_v20  ;;  %v1414_v10 = vrot.slane %v1413_v58, 2 }
  0xe7   :  { %v2836_v26 = vpop.f32.mrf.mxu3  ;;  %v828_v19 = vmax.f32 %v2784_v55, %v2826_v63  ;;  %v1468_v41 = vrot.slane %v1467_v5, 4  ;;  %vm1052_vm5 = vcmp.eq.f32.partialorder %v2681_v47, %v771_v62  ;;  %vm1060_vm6 = vcmp.eq.f32.partialorder %v2721_v43, %v771_v62 }
  0xe8   :  { %2269 = vmatmul.msk.bf16.gmra.mxu0 %vm117_vm0, %v2485_v30  ;;  %v1180_v3 = vsel %vm1052_vm5, %v2529_v60, 16.0  ;;  %v1188_v25 = vsel %vm1060_vm6, %v2531_v61, 16.0  ;;  %vm1053_vm7 = vcmp.eq.f32.partialorder %v2705_v16, %v778_v7  ;;  %vm1061_vm8 = vcmp.eq.f32.partialorder %v2740_v48, %v778_v7  ;;  %v2858_v42 = vpop.f32.mrf.mxu1 }
  0xe9   :  { %v1421_v59 = vrot.slane %v1420_v44, 2  ;;  %v1181_v53 = vsel %vm1053_vm7, %v2529_v60, 16.0  ;;  %v1189_v47 = vsel %vm1061_vm8, %v2531_v61, 16.0  ;;  %v784_v43 = vrot.slane %v783_v12, 1 }
  0xea   :  { %v815_v36 = vrot.slane %v814_v23, 4  ;;  %v822_v56 = vrot.slane %v821_v13, 4  ;;  %v1428_v15 = vrot.slane %v1427_v17, 2  ;;  %v1433_v4 = vrot.slane %v2818_v1, 4 }
  0xeb   :  { %2277 = vmatmul.msk.bf16.gmra.mxu1 %vm117_vm0, %v2485_v30  ;;  %2285 = vmatmul.msk.bf16.gmra.mxu2 %vm117_vm0, %v2485_v30  ;;  %v1469_v16 = vmin.f32 %v1467_v5, %v1468_v41  ;;  %v1481_v29 = vmin.f32 %v1181_v53, %v1189_v47  ;;  %v785_v48 = vmax.f32 %v783_v12, %v784_v43  ;;  %v829_v32 = vrot.slane %v828_v19, 4 }
  0xec   :  { %2293 = vmatmul.msk.bf16.gmra.mxu3 %vm117_vm0, %v2485_v30  ;;  %v1474_v30 = vmin.f32 %v1180_v3, %v1188_v25  ;;  %v816_v20 = vmax.f32 %v814_v23, %v815_v36  ;;  %v823_v8 = vmax.f32 %v821_v13, %v822_v56  ;;  %v1380_v11 = vmin.f32 %v2803_v9, %v1379_v34 }
  0xed   :  { %v1415_v14 = vmin.f32 %v1413_v58, %v1414_v10  ;;  %v1422_v62 = vmin.f32 %v1420_v44, %v1421_v59  ;;  %vm1054_vm9 = vcmp.eq.f32.partialorder %v2709_v18, %v785_v48  ;;  %vm1062_vm10 = vcmp.eq.f32.partialorder %v2748_v39, %v785_v48  ;;  %v2876_v47 = vpop.f32.mrf.mxu0 }
  0xee   :  { %v1475_v7 = vrot.slane %v1474_v30, 4  ;;  %v2863_v3 = vpop.f32.mrf.mxu2  ;;  %v817_v25 = vrot.slane %v816_v20, 2  ;;  %v824_v37 = vrot.slane %v823_v8, 2  ;;  %v1429_v27 = vmin.f32 %v1427_v17, %v1428_v15 }
  0xef   :  { %v1434_v5 = vmin.f32 %v2818_v1, %v1433_v4  ;;  %v1470_v12 = vrot.slane %v1469_v16, 2  ;;  %v1182_v23 = vsel %vm1054_vm9, %v2529_v60, 16.0  ;;  %v2869_v13 = vpop.f32.mrf.mxu3  ;;  %v1190_v9 = vsel %vm1062_vm10, %v2531_v61, 16.0 }
  0xf0   :  { %v818_v34 = vmax.f32 %v816_v20, %v817_v25  ;;  %v825_v58 = vmax.f32 %v823_v8, %v824_v37  ;;  %v830_v44 = vmax.f32 %v828_v19, %v829_v32  ;;  %v1381_v41 = vrot.slane %v1380_v11, 1  ;;  %v2888_v36 = vpop.f32.mrf.mxu1 }
  0xf1   :  { %v1476_v10 = vmin.f32 %v1474_v30, %v1475_v7  ;;  %v1482_v18 = vrot.slane %v1481_v29, 4  ;;  %v2872_v59 = vmin.f32 %v1182_v23, %v1190_v9  ;;  %v835_v1 = vmax.f32 %v2791_v0, %v2836_v26 }
  0xf2   :  { %v819_v39 = vrot.slane %v818_v34, 1  ;;  %v826_v53 = vrot.slane %v825_v58, 1  ;;  %v831_v17 = vrot.slane %v830_v44, 2  ;;  %v2881_v43 = vmin.f32 %v2789_v49, %v1360_v54 }
  0xf3   :  { %v2886_v37 = vmin.f32 %v2798_v28, %v1367_v57  ;;  %v1416_v19 = vrot.slane %v1415_v14, 1  ;;  %v1423_v30 = vrot.slane %v1422_v62, 1  ;;  %v1430_v56 = vrot.slane %v1429_v27, 1 }
  0xf4   :  { %v1435_v15 = vrot.slane %v1434_v5, 2  ;;  %v1471_v4 = vmin.f32 %v1469_v16, %v1470_v12  ;;  %v820_v48 = vmax.f32 %v818_v34, %v819_v39  ;;  %v4233_v49 = vrot.slane %v2800_v22, 1 }
  0xf5   :  { %v1477_v28 = vrot.slane %v1476_v10, 2  ;;  %v1483_v57 = vmin.f32 %v1481_v29, %v1482_v18  ;;  %v827_v20 = vmax.f32 %v825_v58, %v826_v53  ;;  %v2901_v8 = vmin.f32 %v1380_v11, %v1381_v41  ;;  %v2930_v53 = vpop.f32.mrf.mxu0 }
  0xf6   :  { %v2897_v54 = vmin.f32 %v2800_v22, %v4233_v49  ;;  %vm1067_vm11 = vcmp.eq.f32.partialorder %v2760_v21, %v820_v48  ;;  %vm1075_vm12 = vcmp.eq.f32.partialorder %v2805_v35, %v820_v48  ;;  %v832_v16 = vmax.f32 %v830_v44, %v831_v17  ;;  %v2912_v25 = vpop.f32.mrf.mxu2 }
  0xf7   :  { %v2907_v32 = vmin.f32 %v1415_v14, %v1416_v19  ;;  %v2909_v22 = vmin.f32 %v1422_v62, %v1423_v30  ;;  %v1195_v29 = vsel %vm1067_vm11, %v2529_v60, 16.0  ;;  %v836_v7 = vrot.slane %v835_v1, 4 }
  0xf8   :  { %2270 = vmatmul.msk.bf16.gmra.mxu0 %vm117_vm0, %v2498_v31  ;;  %v2914_v12 = vmin.f32 %v1429_v27, %v1430_v56  ;;  %v2916_v11 = vmin.f32 %v1434_v5, %v1435_v15  ;;  %v1472_v21 = vrot.slane %v1471_v4, 1  ;;  %v1203_v35 = vsel %vm1075_vm12, %v2531_v61, 16.0  ;;  %v2934_v56 = vpop.f32.mrf.mxu1 }
  0xf9   :  { %v1478_v23 = vmin.f32 %v1476_v10, %v1477_v28  ;;  %v1484_v9 = vrot.slane %v1483_v57, 2  ;;  %v1523_v34 = vmin.f32 %v1195_v29, %v1203_v35  ;;  %vm1068_vm13 = vcmp.eq.f32.partialorder %v2769_v24, %v827_v20 }
  0xfa   :  { %v1489_v14 = vrot.slane %v2872_v59, 4  ;;  %vm1076_vm14 = vcmp.eq.f32.partialorder %v2812_v52, %v827_v20  ;;  %v1196_v62 = vsel %vm1068_vm13, %v2529_v60, 16.0  ;;  %v833_v27 = vrot.slane %v832_v16, 1 }
  0xfb   :  { %2278 = vmatmul.msk.bf16.gmra.mxu1 %vm117_vm0, %v2498_v31  ;;  %2286 = vmatmul.msk.bf16.gmra.mxu2 %vm117_vm0, %v2498_v31  ;;  %v1524_v58 = vrot.slane %v1523_v34, 4  ;;  %v1204_v5 = vsel %vm1076_vm14, %v2531_v61, 16.0  ;;  %v837_v44 = vmax.f32 %v835_v1, %v836_v7  ;;  %v870_v41 = vmax.f32 %v2855_v46, %v2876_v47 }
  0xfc   :  { %2294 = vmatmul.msk.bf16.gmra.mxu3 %vm117_vm0, %v2498_v31  ;;  %v2920_v31 = vpop.f32.mrf.mxu3  ;;  %v1473_v10 = vmin.f32 %v1471_v4, %v1472_v21  ;;  %v1530_v18 = vmin.f32 %v1196_v62, %v1204_v5  ;;  %v834_v39 = vmax.f32 %v832_v16, %v833_v27  ;;  %v877_v24 = vmax.f32 %v2858_v42, %v2888_v36 }
  0xfd   :  { %v1479_v17 = vrot.slane %v1478_v23, 1  ;;  %v838_v52 = vrot.slane %v837_v44, 2  ;;  %v871_v19 = vrot.slane %v870_v41, 4  ;;  %v884_v30 = vmax.f32 %v2863_v3, %v2912_v25 }
  0xfe   :  { %v1485_v1 = vmin.f32 %v1483_v57, %v1484_v9  ;;  %v1525_v15 = vmin.f32 %v1523_v34, %v1524_v58  ;;  %vm1069_vm15 = vcmp.eq.f32.partialorder %v2784_v55, %v834_v39  ;;  %vm1077_vm1 = vcmp.eq.f32.partialorder %v2826_v63, %v834_v39  ;;  %v2946_v63 = vpop.f32.mrf.mxu2 }
  0xff   :  { %v1490_v4 = vmin.f32 %v2872_v59, %v1489_v14  ;;  %v1197_v48 = vsel %vm1069_vm15, %v2529_v60, 16.0  ;;  %v1205_v49 = vsel %vm1077_vm1, %v2531_v61, 16.0  ;;  %v839_v28 = vmax.f32 %v837_v44, %v838_v52 }
 0x100   :  { %v1531_v20 = vrot.slane %v1530_v18, 4  ;;  %v2941_v16 = vmin.f32 %v1197_v48, %v1205_v49  ;;  %v872_v29 = vmax.f32 %v870_v41, %v871_v19  ;;  %v878_v7 = vrot.slane %v877_v24, 4 }
 0x101   :  { %v1437_v21 = vrot.slane %v2916_v11, 1  ;;  %v840_v57 = vrot.slane %v839_v28, 1  ;;  %v885_v35 = vrot.slane %v884_v30, 4  ;;  %v891_v55 = vmax.f32 %v2869_v13, %v2920_v31 }
 0x102   :  { %vm1755_vm2 = vcmp.eq.f32.partialorder %v2529_v60, %v1473_v10  ;;  %v1526_v59 = vrot.slane %v1525_v15, 2  ;;  %v873_v9 = vrot.slane %v872_v29, 2  ;;  %v879_v34 = vmax.f32 %v877_v24, %v878_v7 }
 0x103   :  { %vm1763_vm3 = vcmp.eq.f32.partialorder %v2531_v61, %v1473_v10  ;;  %v1480_v14 = vmin.f32 %v1478_v23, %v1479_v17  ;;  %v841_v62 = vmax.f32 %v839_v28, %v840_v57  ;;  %v886_v27 = vmax.f32 %v884_v30, %v885_v35  ;;  %v2956_v17 = vpop.f32.mrf.mxu0 }
 0x104   :  { %v2950_v58 = vpop.f32.mrf.mxu3  ;;  %v1486_v5 = vrot.slane %v1485_v1, 1  ;;  %v1491_v44 = vrot.slane %v1490_v4, 2  ;;  %v1532_v41 = vmin.f32 %v1530_v18, %v1531_v20  ;;  %v874_v39 = vmax.f32 %v872_v29, %v873_v9  ;;  %v2966_v20 = vpop.f32.mrf.mxu1 }
 0x105   :  { %vm1070_vm4 = vcmp.eq.f32.partialorder %v2791_v0, %v841_v62  ;;  %vm1078_vm5 = vcmp.eq.f32.partialorder %v2836_v26, %v841_v62  ;;  %v880_v52 = vrot.slane %v879_v34, 2  ;;  %v887_v19 = vrot.slane %v886_v27, 2 }
 0x106   :  { %v1527_v48 = vmin.f32 %v1525_v15, %v1526_v59  ;;  %v1198_v24 = vsel %vm1070_vm4, %v2529_v60, 16.0  ;;  %v1206_v49 = vsel %vm1078_vm5, %v2531_v61, 16.0  ;;  %v892_v23 = vrot.slane %v891_v55, 4 }
 0x107   :  { %v2959_v30 = vmin.f32 %v2916_v11, %v1437_v21  ;;  %v4225_v28 = vmov 0.0   ;;  %v1544_v26 = vmin.f32 %v1198_v24, %v1206_v49  ;;  %v875_v18 = vrot.slane %v874_v39, 1 }
 0x108   :  { %v2964_v0 = vsel %vm1755_vm2, 1.0, %v4225_v28  ;;  %v2971_v15 = vsel %vm1763_vm3, 1.0, %v4225_v28  ;;  %vm1756_vm6 = vcmp.eq.f32.partialorder %v2529_v60, %v1480_v14  ;;  %vm1764_vm7 = vcmp.eq.f32.partialorder %v2531_v61, %v1480_v14 }
 0x109   :  { %4234 = vst [vmem:[#allocation5_spill] sm:$0xff] %v2959_v30  ;;  %v2975_v11 = vmin.f32 %v1490_v4, %v1491_v44  ;;  %v1533_v29 = vrot.slane %v1532_v41, 2  ;;  %v876_v7 = vmax.f32 %v874_v39, %v875_v18  ;;  %v881_v21 = vmax.f32 %v879_v34, %v880_v52  ;;  %v2987_v4 = vpop.f32.mrf.mxu2 }
 0x10a   :  { %4235 = vst [vmem:[#allocation6_spill] sm:$0xff] %v2964_v0  ;;  %v888_v57 = vmax.f32 %v886_v27, %v887_v19  ;;  %v2977_v35 = vmin.f32 %v1485_v1, %v1486_v5  ;;  %v1528_v59 = vrot.slane %v1527_v48, 1  ;;  %v1538_v9 = vrot.slane %v2941_v16, 4 }
 0x10b   :  { %4236 = vst [vmem:[#allocation7_spill] sm:$0xff] %v2971_v15  ;;  %v893_v62 = vmax.f32 %v891_v55, %v892_v23  ;;  %v2981_v10 = vsel %vm1756_vm6, 1.0, %v4225_v28  ;;  %v2984_v24 = vsel %vm1764_vm7, 1.0, %v4225_v28  ;;  %v1545_v49 = vrot.slane %v1544_v26, 4 }
 0x10c   :  { %4237 = vst [vmem:[#allocation8_spill] sm:$0xff] %v2977_v35  ;;  %vm1083_vm8 = vcmp.eq.f32.partialorder %v2855_v46, %v876_v7  ;;  %v1493_v34 = vrot.slane %v2975_v11, 1  ;;  %vm1091_vm9 = vcmp.eq.f32.partialorder %v2876_v47, %v876_v7  ;;  %v882_v14 = vrot.slane %v881_v21, 1  ;;  %v2993_v39 = vpop.f32.mrf.mxu3 }
 0x10d   :  { %4238 = vst [vmem:[#allocation9_spill] sm:$0xff] %v2981_v10  ;;  %v1211_v1 = vsel %vm1083_vm8, %v2529_v60, 16.0  ;;  %v1534_v27 = vmin.f32 %v1532_v41, %v1533_v29  ;;  %v1219_v55 = vsel %vm1091_vm9, %v2531_v61, 16.0  ;;  %v889_v5 = vrot.slane %v888_v57, 1 }
 0x10e   :  { %4239 = vst [vmem:[#allocation10_spill] sm:$0xff] %v2984_v24  ;;  %v894_v44 = vrot.slane %v893_v62, 2  ;;  %v2995_v52 = vmin.f32 %v1527_v48, %v1528_v59  ;;  %v1539_v46 = vmin.f32 %v2941_v16, %v1538_v9  ;;  %v1579_v19 = vmin.f32 %v1211_v1, %v1219_v55  ;;  %v3004_v48 = vpop.f32.mrf.mxu0 }
 0x10f   :  { %v883_v23 = vmax.f32 %v881_v21, %v882_v14  ;;  %v1546_v18 = vmin.f32 %v1544_v26, %v1545_v49  ;;  %v890_v28 = vmax.f32 %v888_v57, %v889_v5  ;;  %v926_v47 = vmax.f32 %v2930_v53, %v2956_v17  ;;  %v3009_v21 = vpop.f32.mrf.mxu1 }
 0x110   :  { %v895_v10 = vmax.f32 %v893_v62, %v894_v44  ;;  %v1580_v7 = vrot.slane %v1579_v19, 4  ;;  %v933_v41 = vmax.f32 %v2934_v56, %v2966_v20  ;;  %v1535_v29 = vrot.slane %v1534_v27, 1 }
 0x111   :  { %vm1084_vm10 = vcmp.eq.f32.partialorder %v2858_v42, %v883_v23  ;;  %vm1092_vm11 = vcmp.eq.f32.partialorder %v2888_v36, %v883_v23  ;;  %vm1085_vm12 = vcmp.eq.f32.partialorder %v2863_v3, %v890_v28  ;;  %vm1093_vm13 = vcmp.eq.f32.partialorder %v2912_v25, %v890_v28  ;;  %v3018_v25 = vpop.f32.mrf.mxu2 }
 0x112   :  { %v1212_v16 = vsel %vm1084_vm10, %v2529_v60, 16.0  ;;  %v1220_v26 = vsel %vm1092_vm11, %v2531_v61, 16.0  ;;  %v1581_v57 = vmin.f32 %v1579_v19, %v1580_v7  ;;  %v1213_v42 = vsel %vm1085_vm12, %v2529_v60, 16.0 }
 0x113   :  { %v1586_v59 = vmin.f32 %v1212_v16, %v1220_v26  ;;  %v1540_v36 = vrot.slane %v1539_v46, 2  ;;  %v1221_v9 = vsel %vm1093_vm13, %v2531_v61, 16.0  ;;  %v896_v62 = vrot.slane %v895_v10, 1 }
 0x114   :  { %v927_v49 = vrot.slane %v926_v47, 4  ;;  %v1547_v1 = vrot.slane %v1546_v18, 2  ;;  %v1593_v55 = vmin.f32 %v1213_v42, %v1221_v9  ;;  %v934_v5 = vrot.slane %v933_v41, 4  ;;  %v3024_v26 = vpop.f32.mrf.mxu3 }
 0x115   :  { %v1587_v14 = vrot.slane %v1586_v59, 4  ;;  %v897_v44 = vmax.f32 %v895_v10, %v896_v62  ;;  %v940_v3 = vmax.f32 %v2946_v63, %v2987_v4  ;;  %v947_v19 = vmax.f32 %v2950_v58, %v2993_v39 }
 0x116   :  { %v928_v23 = vmax.f32 %v926_v47, %v927_v49  ;;  %vm1771_vm14 = vcmp.eq.f32.partialorder %v2529_v60, %v2995_v52  ;;  %v1536_v28 = vmin.f32 %v1534_v27, %v1535_v29  ;;  %v1582_v7 = vrot.slane %v1581_v57, 2 }
 0x117   :  { %v935_v16 = vmax.f32 %v933_v41, %v934_v5  ;;  %vm1086_vm15 = vcmp.eq.f32.partialorder %v2869_v13, %v897_v44  ;;  %vm1094_vm1 = vcmp.eq.f32.partialorder %v2920_v31, %v897_v44  ;;  %v941_v47 = vrot.slane %v940_v3, 4  ;;  %v3031_v5 = vpop.f32.mrf.mxu0 }
 0x118   :  { %v929_v10 = vrot.slane %v928_v23, 2  ;;  %v1541_v42 = vmin.f32 %v1539_v46, %v1540_v36  ;;  %v1548_v9 = vmin.f32 %v1546_v18, %v1547_v1  ;;  %v1588_v62 = vmin.f32 %v1586_v59, %v1587_v14  ;;  %v3033_v59 = vpop.f32.mrf.mxu1 }
 0x119   :  { %v1214_v49 = vsel %vm1086_vm15, %v2529_v60, 16.0  ;;  %v1222_v0 = vsel %vm1094_vm1, %v2531_v61, 16.0  ;;  %v936_v15 = vrot.slane %v935_v16, 2  ;;  %v942_v27 = vmax.f32 %v940_v3, %v941_v47 }
 0x11a   :  { %v930_v24 = vmax.f32 %v928_v23, %v929_v10  ;;  %v3029_v41 = vmin.f32 %v2975_v11, %v1493_v34  ;;  %v1583_v13 = vmin.f32 %v1581_v57, %v1582_v7  ;;  %v1594_v29 = vrot.slane %v1593_v55, 4  ;;  %v3047_v10 = vpop.f32.mrf.mxu2 }
 0x11b   :  { %v1600_v31 = vmin.f32 %v1214_v49, %v1222_v0  ;;  %v937_v35 = vmax.f32 %v935_v16, %v936_v15  ;;  %v943_v46 = vrot.slane %v942_v27, 2  ;;  %v948_v18 = vrot.slane %v947_v19, 4 }
 0x11c   :  { %4240 = vst [vmem:[#allocation11_spill] sm:$0xff] %v3029_v41  ;;  %v931_v44 = vrot.slane %v930_v24, 1  ;;  %vm1779_vm2 = vcmp.eq.f32.partialorder %v2531_v61, %v2995_v52  ;;  %v4241_v36 = vmov 0.0   ;;  %vm1772_vm3 = vcmp.eq.f32.partialorder %v2529_v60, %v1536_v28 }
 0x11d   :  { %v3041_v11 = vsel %vm1771_vm14, 1.0, %v4241_v36  ;;  %vm1780_vm4 = vcmp.eq.f32.partialorder %v2531_v61, %v1536_v28  ;;  %v1542_v0 = vrot.slane %v1541_v42, 1  ;;  %v1549_v34 = vrot.slane %v1548_v9, 1 }
 0x11e   :  { %4242 = vst [vmem:[#allocation12_spill] sm:$0xff] %v3041_v11  ;;  %v1589_v15 = vrot.slane %v1588_v62, 2  ;;  %v932_v57 = vmax.f32 %v930_v24, %v931_v44  ;;  %v1584_v1 = vrot.slane %v1583_v13, 1  ;;  %v1595_v14 = vmin.f32 %v1593_v55, %v1594_v29 }
 0x11f   :  { %v1601_v23 = vrot.slane %v1600_v31, 4  ;;  %v938_v3 = vrot.slane %v937_v35, 1  ;;  %v944_v7 = vmax.f32 %v942_v27, %v943_v46  ;;  %v949_v16 = vmax.f32 %v947_v19, %v948_v18  ;;  %v3071_v27 = vpop.f32.mrf.mxu3 }
 0x120   :  { %vm1099_vm5 = vcmp.eq.f32.partialorder %v2930_v53, %v932_v57  ;;  %vm1107_vm6 = vcmp.eq.f32.partialorder %v2956_v17, %v932_v57  ;;  %v3053_v47 = vsel %vm1779_vm2, 1.0, %v4241_v36  ;;  %v3058_v24 = vsel %vm1772_vm3, 1.0, %v4241_v36 }
 0x121   :  { %4243 = vst [vmem:[#allocation13_spill] sm:$0xff] %v3053_v47  ;;  %v3063_v53 = vsel %vm1780_vm4, 1.0, %v4241_v36  ;;  %v1227_v17 = vsel %vm1099_vm5, %v2529_v60, 16.0  ;;  %v3066_v55 = vmin.f32 %v1541_v42, %v1542_v0  ;;  %v3068_v19 = vmin.f32 %v1548_v9, %v1549_v34  ;;  %v3085_v34 = vpop.f32.mrf.mxu1 }
 0x122   :  { %4244 = vst [vmem:[#allocation14_spill] sm:$0xff] %v3058_v24  ;;  %v1590_v49 = vmin.f32 %v1588_v62, %v1589_v15  ;;  %v1235_v52 = vsel %vm1107_vm6, %v2531_v61, 16.0  ;;  %v3073_v29 = vmin.f32 %v1583_v13, %v1584_v1  ;;  %v1596_v44 = vrot.slane %v1595_v14, 2  ;;  %v3081_v62 = vpop.f32.mrf.mxu0 }
 0x123   :  { %4245 = vst [vmem:[#allocation15_spill] sm:$0xff] %v3063_v53  ;;  %v1635_v46 = vmin.f32 %v1227_v17, %v1235_v52  ;;  %v939_v18 = vmax.f32 %v937_v35, %v938_v3  ;;  %v1602_v57 = vmin.f32 %v1600_v31, %v1601_v23  ;;  %v945_v28 = vrot.slane %v944_v7, 1 }
 0x124   :  { %4246 = vst [vmem:[#allocation16_spill] sm:$0xff] %v3066_v55  ;;  %v950_v24 = vrot.slane %v949_v16, 2  ;;  %v562_v11 = vmax.f32 %v3004_v48, %v3031_v5  ;;  %v569_v9 = vmax.f32 %v3009_v21, %v3033_v59  ;;  %v1591_v13 = vrot.slane %v1590_v49, 1 }
 0x125   :  { %4247 = vst [vmem:[#allocation17_spill] sm:$0xff] %v3068_v19  ;;  %v1636_v42 = vrot.slane %v1635_v46, 4  ;;  %vm1100_vm7 = vcmp.eq.f32.partialorder %v2934_v56, %v939_v18  ;;  %vm1108_vm8 = vcmp.eq.f32.partialorder %v2966_v20, %v939_v18  ;;  %v946_v31 = vmax.f32 %v944_v7, %v945_v28 }
 0x126   :  { %v1228_v0 = vsel %vm1100_vm7, %v2529_v60, 16.0  ;;  %v1236_v35 = vsel %vm1108_vm8, %v2531_v61, 16.0  ;;  %v951_v23 = vmax.f32 %v949_v16, %v950_v24  ;;  %v563_v3 = vrot.slane %v562_v11, 4 }
 0x127   :  { %v1637_v15 = vmin.f32 %v1635_v46, %v1636_v42  ;;  %v1642_v1 = vmin.f32 %v1228_v0, %v1236_v35  ;;  %v1603_v56 = vrot.slane %v1602_v57, 2  ;;  %vm1101_vm9 = vcmp.eq.f32.partialorder %v2946_v63, %v946_v31  ;;  %v3091_v46 = vpop.f32.mrf.mxu2  ;;  %v3095_v55 = vpop.f32.mrf.mxu3 }
 0x128   :  { %vm1109_vm10 = vcmp.eq.f32.partialorder %v2987_v4, %v946_v31  ;;  %v570_v20 = vrot.slane %v569_v9, 4  ;;  %v1229_v18 = vsel %vm1101_vm9, %v2529_v60, 16.0  ;;  %v952_v7 = vrot.slane %v951_v23, 1 }
 0x129   :  { %v1638_v17 = vrot.slane %v1637_v15, 2  ;;  %v1643_v52 = vrot.slane %v1642_v1, 4  ;;  %v1237_v53 = vsel %vm1109_vm10, %v2531_v61, 16.0  ;;  %v564_v28 = vmax.f32 %v562_v11, %v563_v3 }
 0x12a   :  { %v1649_v47 = vmin.f32 %v1229_v18, %v1237_v53  ;;  %v571_v19 = vmax.f32 %v569_v9, %v570_v20  ;;  %v1592_v16 = vmin.f32 %v1590_v49, %v1591_v13  ;;  %v1597_v24 = vmin.f32 %v1595_v14, %v1596_v44 }
 0x12b   :  { %v1644_v42 = vmin.f32 %v1642_v1, %v1643_v52  ;;  %v576_v63 = vmax.f32 %v3018_v25, %v3047_v10  ;;  %v1639_v4 = vmin.f32 %v1637_v15, %v1638_v17  ;;  %v953_v0 = vmax.f32 %v951_v23, %v952_v7 }
 0x12c   :  { %v565_v35 = vrot.slane %v564_v28, 2  ;;  %v572_v31 = vrot.slane %v571_v19, 2  ;;  %v1604_v41 = vmin.f32 %v1602_v57, %v1603_v56  ;;  %v1650_v30 = vrot.slane %v1649_v47, 4  ;;  %v3105_v57 = vpop.f32.mrf.mxu0  ;;  %v3107_v56 = vpop.f32.mrf.mxu1 }
 0x12d   :  { %v577_v53 = vrot.slane %v576_v63, 4  ;;  %v583_v11 = vmax.f32 %v3024_v26, %v3071_v27  ;;  %v1645_v9 = vrot.slane %v1644_v42, 2  ;;  %vm1102_vm11 = vcmp.eq.f32.partialorder %v2950_v58, %v953_v0 }
 0x12e   :  { %vm1110_vm12 = vcmp.eq.f32.partialorder %v2993_v39, %v953_v0  ;;  %v566_v14 = vmax.f32 %v564_v28, %v565_v35  ;;  %vm1787_vm13 = vcmp.eq.f32.partialorder %v2529_v60, %v3073_v29  ;;  %v1598_v49 = vrot.slane %v1597_v24, 1 }
 0x12f   :  { %v1230_v44 = vsel %vm1102_vm11, %v2529_v60, 16.0  ;;  %v1238_v13 = vsel %vm1110_vm12, %v2531_v61, 16.0  ;;  %v1640_v15 = vrot.slane %v1639_v4, 1  ;;  %v573_v3 = vmax.f32 %v571_v19, %v572_v31 }
 0x130   :  { %v1656_v1 = vmin.f32 %v1230_v44, %v1238_v13  ;;  %v567_v23 = vrot.slane %v566_v14, 1  ;;  %vm1795_vm14 = vcmp.eq.f32.partialorder %v2531_v61, %v3073_v29  ;;  %vm1788_vm15 = vcmp.eq.f32.partialorder %v2529_v60, %v1592_v16 }
 0x131   :  { %v578_v58 = vmax.f32 %v576_v63, %v577_v53  ;;  %v584_v39 = vrot.slane %v583_v11, 4  ;;  %vm1796_vm1 = vcmp.eq.f32.partialorder %v2531_v61, %v1592_v16  ;;  %v1605_v20 = vrot.slane %v1604_v41, 1 }
 0x132   :  { %v1646_v17 = vmin.f32 %v1644_v42, %v1645_v9  ;;  %v1651_v52 = vmin.f32 %v1649_v47, %v1650_v30  ;;  %v3117_v18 = vsel %vm1787_vm13, 1.0, %v4241_v36  ;;  %v568_v19 = vmax.f32 %v566_v14, %v567_v23  ;;  %v3127_v42 = vpop.f32.mrf.mxu2 }
 0x133   :  { %4248 = vst [vmem:[#allocation18_spill] sm:$0xff] %v3117_v18  ;;  %v574_v7 = vrot.slane %v573_v3, 1  ;;  %v579_v28 = vrot.slane %v578_v58, 2  ;;  %v3120_v0 = vsel %vm1795_vm14, 1.0, %v4241_v36  ;;  %v3123_v63 = vsel %vm1788_vm15, 1.0, %v4241_v36 }
 0x134   :  { %4249 = vst [vmem:[#allocation19_spill] sm:$0xff] %v3120_v0  ;;  %v3125_v35 = vmin.f32 %v1597_v24, %v1598_v49  ;;  %v1641_v16 = vmin.f32 %v1639_v4, %v1640_v15  ;;  %v3130_v30 = vsel %vm1796_vm1, 1.0, %v4241_v36  ;;  %vm991_vm2 = vcmp.eq.f32.partialorder %v3004_v48, %v568_v19  ;;  %v3138_v24 = vpop.f32.mrf.mxu3  ;;  %v3146_v13 = vpop.f32.mrf.mxu0 }
 0x135   :  { %4250 = vst [vmem:[#allocation20_spill] sm:$0xff] %v3123_v63  ;;  %vm999_vm3 = vcmp.eq.f32.partialorder %v3031_v5, %v568_v19  ;;  %v585_v47 = vmax.f32 %v583_v11, %v584_v39  ;;  %v3134_v29 = vmin.f32 %v1604_v41, %v1605_v20  ;;  %v1647_v31 = vrot.slane %v1646_v17, 1 }
 0x136   :  { %4251 = vst [vmem:[#allocation21_spill] sm:$0xff] %v3130_v30  ;;  %v1652_v53 = vrot.slane %v1651_v52, 2  ;;  %v618_v9 = vmax.f32 %v3081_v62, %v3105_v57  ;;  %v1119_v4 = vsel %vm991_vm2, %v2529_v60, 16.0  ;;  %v1127_v14 = vsel %vm999_vm3, %v2531_v61, 16.0 }
 0x137   :  { %4252 = vst [vmem:[#allocation22_spill] sm:$0xff] %v3134_v29  ;;  %v575_v49 = vmax.f32 %v573_v3, %v574_v7  ;;  %v580_v44 = vmax.f32 %v578_v58, %v579_v28  ;;  %vm1803_vm4 = vcmp.eq.f32.partialorder %v2529_v60, %v1641_v16  ;;  %vm1811_vm5 = vcmp.eq.f32.partialorder %v2531_v61, %v1641_v16  ;;  %v3150_v58 = vpop.f32.mrf.mxu1 }
 0x138   :  { %v1657_v48 = vrot.slane %v1656_v1, 4  ;;  %v1271_v41 = vmin.f32 %v1119_v4, %v1127_v14  ;;  %v586_v11 = vrot.slane %v585_v47, 2  ;;  %v1648_v15 = vmin.f32 %v1646_v17, %v1647_v31 }
 0x139   :  { %vm992_vm6 = vcmp.eq.f32.partialorder %v3009_v21, %v575_v49  ;;  %vm1000_vm7 = vcmp.eq.f32.partialorder %v3033_v59, %v575_v49  ;;  %v581_v5 = vrot.slane %v580_v44, 1  ;;  %v619_v28 = vrot.slane %v618_v9, 4 }
 0x13a   :  { %v1272_v23 = vrot.slane %v1271_v41, 4  ;;  %v1120_v39 = vsel %vm992_vm6, %v2529_v60, 16.0  ;;  %v1128_v3 = vsel %vm1000_vm7, %v2531_v61, 16.0  ;;  %v587_v7 = vmax.f32 %v585_v47, %v586_v11 }
 0x13b   :  { %v1278_v20 = vmin.f32 %v1120_v39, %v1128_v3  ;;  %v582_v19 = vmax.f32 %v580_v44, %v581_v5  ;;  %v3152_v4 = vmin.f32 %v1651_v52, %v1652_v53  ;;  %v625_v59 = vmax.f32 %v3085_v34, %v3107_v56  ;;  %v3164_v44 = vpop.f32.mrf.mxu2 }
 0x13c   :  { %v1273_v21 = vmin.f32 %v1271_v41, %v1272_v23  ;;  %v632_v17 = vmax.f32 %v3091_v46, %v3127_v42  ;;  %v588_v14 = vrot.slane %v587_v7, 1  ;;  %v3160_v49 = vmin.f32 %v1656_v1, %v1657_v48  ;;  %v3170_v1 = vpop.f32.mrf.mxu3  ;;  %v3191_v16 = vpop.f32.mrf.mxu0 }
 0x13d   :  { %v1279_v31 = vrot.slane %v1278_v20, 4  ;;  %vm993_vm8 = vcmp.eq.f32.partialorder %v3018_v25, %v582_v19  ;;  %vm1001_vm9 = vcmp.eq.f32.partialorder %v3047_v10, %v582_v19  ;;  %v620_v53 = vmax.f32 %v618_v9, %v619_v28 }
 0x13e   :  { %v1121_v47 = vsel %vm993_vm8, %v2529_v60, 16.0  ;;  %v1129_v52 = vsel %vm1001_vm9, %v2531_v61, 16.0  ;;  %vm1804_vm10 = vcmp.eq.f32.partialorder %v2529_v60, %v1648_v15  ;;  %v589_v5 = vmax.f32 %v587_v7, %v588_v14 }
 0x13f   :  { %v1280_v41 = vmin.f32 %v1278_v20, %v1279_v31  ;;  %v626_v11 = vrot.slane %v625_v59, 4  ;;  %vm1812_vm11 = vcmp.eq.f32.partialorder %v2531_v61, %v1648_v15  ;;  %v621_v25 = vrot.slane %v620_v53, 2 }
 0x140   :  { %v633_v23 = vrot.slane %v632_v17, 4  ;;  %v639_v10 = vmax.f32 %v3095_v55, %v3138_v24  ;;  %v3175_v9 = vsel %vm1803_vm4, 1.0, %v4241_v36  ;;  %v3180_v48 = vsel %vm1811_vm5, 1.0, %v4241_v36 }
 0x141   :  { %4253 = vst [vmem:[#allocation23_spill] sm:$0xff] %v3175_v9  ;;  %v1274_v39 = vrot.slane %v1273_v21, 2  ;;  %v1285_v3 = vmin.f32 %v1121_v47, %v1129_v52  ;;  %v3183_v15 = vsel %vm1804_vm10, 1.0, %v4241_v36  ;;  %vm994_vm12 = vcmp.eq.f32.partialorder %v3024_v26, %v589_v5 }
 0x142   :  { %4254 = vst [vmem:[#allocation24_spill] sm:$0xff] %v3180_v48  ;;  %v622_v19 = vmax.f32 %v620_v53, %v621_v25  ;;  %v3188_v7 = vsel %vm1812_vm11, 1.0, %v4241_v36  ;;  %v1659_v28 = vrot.slane %v3160_v49, 2  ;;  %v1281_v31 = vrot.slane %v1280_v41, 2 }
 0x143   :  { %4255 = vst [vmem:[#allocation25_spill] sm:$0xff] %v3183_v15  ;;  %v627_v14 = vmax.f32 %v625_v59, %v626_v11  ;;  %vm1002_vm13 = vcmp.eq.f32.partialorder %v3071_v27, %v589_v5  ;;  %v634_v52 = vmax.f32 %v632_v17, %v633_v23  ;;  %v640_v9 = vrot.slane %v639_v10, 4  ;;  %v3194_v15 = vpop.f32.mrf.mxu1 }
 0x144   :  { %4256 = vst [vmem:[#allocation26_spill] sm:$0xff] %v3188_v7  ;;  %v623_v47 = vrot.slane %v622_v19, 1  ;;  %v3196_v20 = vmin.f32 %v1273_v21, %v1274_v39  ;;  %v1286_v26 = vrot.slane %v1285_v3, 4  ;;  %v1122_v53 = vsel %vm994_vm12, %v2529_v60, 16.0  ;;  %v3208_v39 = vpop.f32.mrf.mxu2  ;;  %v3212_v18 = vpop.f32.mrf.mxu3 }
 0x145   :  { %v628_v25 = vrot.slane %v627_v14, 2  ;;  %v635_v48 = vrot.slane %v634_v52, 2  ;;  %v641_v63 = vmax.f32 %v639_v10, %v640_v9  ;;  %v674_v59 = vmax.f32 %v3146_v13, %v3191_v16 }
 0x146   :  { %v624_v7 = vmax.f32 %v622_v19, %v623_v47  ;;  %v3201_v11 = vmin.f32 %v1280_v41, %v1281_v31  ;;  %v1130_v27 = vsel %vm1002_vm13, %v2531_v61, 16.0  ;;  %v681_v5 = vmax.f32 %v3150_v58, %v3194_v15 }
 0x147   :  { %v629_v17 = vmax.f32 %v627_v14, %v628_v25  ;;  %v636_v21 = vmax.f32 %v634_v52, %v635_v48  ;;  %v642_v23 = vrot.slane %v641_v63, 2  ;;  %v1287_v10 = vmin.f32 %v1285_v3, %v1286_v26 }
 0x148   :  { %vm1007_vm14 = vcmp.eq.f32.partialorder %v3081_v62, %v624_v7  ;;  %vm1015_vm15 = vcmp.eq.f32.partialorder %v3105_v57, %v624_v7  ;;  %v675_v25 = vrot.slane %v674_v59, 4  ;;  %v1292_v30 = vmin.f32 %v1122_v53, %v1130_v27 }
 0x149   :  { %v1135_v9 = vsel %vm1007_vm14, %v2529_v60, 16.0  ;;  %v1143_v41 = vsel %vm1015_vm15, %v2531_v61, 16.0  ;;  %v630_v19 = vrot.slane %v629_v17, 1  ;;  %v637_v47 = vrot.slane %v636_v21, 1 }
 0x14a   :  { %v1327_v31 = vmin.f32 %v1135_v9, %v1143_v41  ;;  %v643_v14 = vmax.f32 %v641_v63, %v642_v23  ;;  %v682_v0 = vrot.slane %v681_v5, 4  ;;  %v688_v57 = vmax.f32 %v3164_v44, %v3208_v39 }
 0x14b   :  { %v631_v62 = vmax.f32 %v629_v17, %v630_v19  ;;  %v638_v7 = vmax.f32 %v636_v21, %v637_v47  ;;  %v676_v52 = vmax.f32 %v674_v59, %v675_v25  ;;  %v695_v63 = vmax.f32 %v3170_v1, %v3212_v18 }
 0x14c   :  { %v1328_v48 = vrot.slane %v1327_v31, 4  ;;  %v644_v3 = vrot.slane %v643_v14, 1  ;;  %v683_v26 = vmax.f32 %v681_v5, %v682_v0  ;;  %v689_v27 = vrot.slane %v688_v57, 4 }
 0x14d   :  { %vm1008_vm1 = vcmp.eq.f32.partialorder %v3085_v34, %v631_v62  ;;  %vm1016_vm2 = vcmp.eq.f32.partialorder %v3107_v56, %v631_v62  ;;  %vm1009_vm3 = vcmp.eq.f32.partialorder %v3091_v46, %v638_v7  ;;  %vm1017_vm4 = vcmp.eq.f32.partialorder %v3127_v42, %v638_v7 }
 0x14e   :  { %v1136_v23 = vsel %vm1008_vm1, %v2529_v60, 16.0  ;;  %v1144_v53 = vsel %vm1016_vm2, %v2531_v61, 16.0  ;;  %v1329_v17 = vmin.f32 %v1327_v31, %v1328_v48  ;;  %v645_v59 = vmax.f32 %v643_v14, %v644_v3 }
 0x14f   :  { %v1334_v9 = vmin.f32 %v1136_v23, %v1144_v53  ;;  %v1137_v34 = vsel %vm1009_vm3, %v2529_v60, 16.0  ;;  %v1145_v56 = vsel %vm1017_vm4, %v2531_v61, 16.0  ;;  %v677_v0 = vrot.slane %v676_v52, 2 }
 0x150   :  { %v684_v5 = vrot.slane %v683_v26, 2  ;;  %v4257_v21 = vrot.slane %v3152_v4, 1  ;;  %v3232_v19 = vmin.f32 %v3160_v49, %v1659_v28  ;;  %v1293_v46 = vrot.slane %v1292_v30, 4 }
 0x151   :  { %v1335_v31 = vrot.slane %v1334_v9, 4  ;;  %v1288_v42 = vrot.slane %v1287_v10, 2  ;;  %vm1010_vm5 = vcmp.eq.f32.partialorder %v3095_v55, %v645_v59  ;;  %v678_v14 = vmax.f32 %v676_v52, %v677_v0 }
 0x152   :  { %v3229_v41 = vmin.f32 %v3152_v4, %v4257_v21  ;;  %v1330_v25 = vrot.slane %v1329_v17, 2  ;;  %v1341_v62 = vmin.f32 %v1137_v34, %v1145_v56  ;;  %vm1018_vm6 = vcmp.eq.f32.partialorder %v3138_v24, %v645_v59 }
 0x153   :  { %v685_v48 = vmax.f32 %v683_v26, %v684_v5  ;;  %v1283_v7 = vrot.slane %v3201_v11, 1  ;;  %v679_v4 = vrot.slane %v678_v14, 1  ;;  %v690_v3 = vmax.f32 %v688_v57, %v689_v27 }
 0x154   :  { %v696_v23 = vrot.slane %v695_v63, 4  ;;  %v1294_v49 = vmin.f32 %v1292_v30, %v1293_v46  ;;  %v1336_v28 = vmin.f32 %v1334_v9, %v1335_v31  ;;  %v1138_v53 = vsel %vm1010_vm5, %v2529_v60, 16.0 }
 0x155   :  { %v686_v21 = vrot.slane %v685_v48, 1  ;;  %v1146_v47 = vsel %vm1018_vm6, %v2531_v61, 16.0  ;;  %v680_v29 = vmax.f32 %v678_v14, %v679_v4  ;;  %v691_v55 = vrot.slane %v690_v3, 2  ;;  %v3254_v14 = vpop.f32.mrf.mxu1 }
 0x156   :  { %v697_v52 = vmax.f32 %v695_v63, %v696_v23  ;;  %v1289_v0 = vmin.f32 %v1287_v10, %v1288_v42  ;;  %v1331_v34 = vmin.f32 %v1329_v17, %v1330_v25  ;;  %v1342_v56 = vrot.slane %v1341_v62, 4  ;;  %v3252_v42 = vpop.f32.mrf.mxu0 }
 0x157   :  { %v687_v24 = vmax.f32 %v685_v48, %v686_v21  ;;  %vm1023_vm7 = vcmp.eq.f32.partialorder %v3146_v13, %v680_v29  ;;  %vm1031_vm8 = vcmp.eq.f32.partialorder %v3191_v16, %v680_v29  ;;  %v692_v57 = vmax.f32 %v690_v3, %v691_v55 }
 0x158   :  { %v698_v26 = vrot.slane %v697_v52, 2  ;;  %v1295_v30 = vrot.slane %v1294_v49, 2  ;;  %v1337_v27 = vrot.slane %v1336_v28, 2  ;;  %v1348_v9 = vmin.f32 %v1138_v53, %v1146_v47 }
 0x159   :  { %v1151_v59 = vsel %vm1023_vm7, %v2529_v60, 16.0  ;;  %vm1691_vm9 = vcmp.eq.f32.partialorder %v2529_v60, %v2726_v50  ;;  %vm1692_vm10 = vcmp.eq.f32.partialorder %v2529_v60, %v2729_v45  ;;  %v1159_v10 = vsel %vm1031_vm8, %v2531_v61, 16.0 }
 0x15a   :  { %vm1024_vm11 = vcmp.eq.f32.partialorder %v3150_v58, %v687_v24  ;;  %vm1032_vm12 = vcmp.eq.f32.partialorder %v3194_v15, %v687_v24  ;;  %v693_v29 = vrot.slane %v692_v57, 1  ;;  %v1383_v13 = vmin.f32 %v1151_v59, %v1159_v10 }
 0x15b   :  { %v1152_v16 = vsel %vm1024_vm11, %v2529_v60, 16.0  ;;  %v1160_v63 = vsel %vm1032_vm12, %v2531_v61, 16.0  ;;  %v699_v17 = vmax.f32 %v697_v52, %v698_v26  ;;  %v1332_v5 = vrot.slane %v1331_v34, 1 }
 0x15c   :  { %v1343_v46 = vmin.f32 %v1341_v62, %v1342_v56  ;;  %v1390_v31 = vmin.f32 %v1152_v16, %v1160_v63  ;;  %v694_v47 = vmax.f32 %v692_v57, %v693_v29  ;;  %v1349_v25 = vrot.slane %v1348_v9, 4 }
 0x15d   :  { %v1384_v48 = vrot.slane %v1383_v13, 4  ;;  %v700_v58 = vrot.slane %v699_v17, 1  ;;  %v1296_v4 = vmin.f32 %v1294_v49, %v1295_v30  ;;  %v3256_v15 = vmin.f32 %v1336_v28, %v1337_v27  ;;  %v3270_v30 = vpop.f32.mrf.mxu2 }
 0x15e   :  { %v1391_v3 = vrot.slane %v1390_v31, 4  ;;  %vm1025_vm13 = vcmp.eq.f32.partialorder %v3164_v44, %v694_v47  ;;  %vm1033_vm14 = vcmp.eq.f32.partialorder %v3208_v39, %v694_v47  ;;  %v1344_v55 = vrot.slane %v1343_v46, 2  ;;  %v3316_v47 = vpop.f32.mrf.mxu1 }
 0x15f   :  { %v1385_v23 = vmin.f32 %v1383_v13, %v1384_v48  ;;  %v1153_v62 = vsel %vm1025_vm13, %v2529_v60, 16.0  ;;  %v1161_v53 = vsel %vm1033_vm14, %v2531_v61, 16.0  ;;  %v701_v21 = vmax.f32 %v699_v17, %v700_v58 }
 0x160   :  { %v1392_v52 = vmin.f32 %v1390_v31, %v1391_v3  ;;  %v1397_v56 = vmin.f32 %v1153_v62, %v1161_v53  ;;  %v1290_v24 = vrot.slane %v1289_v0, 1  ;;  %vm1699_vm15 = vcmp.eq.f32.partialorder %v2531_v61, %v2726_v50  ;;  %v3314_v31 = vpop.f32.mrf.mxu0 }
 0x161   :  { %vm1700_vm1 = vcmp.eq.f32.partialorder %v2531_v61, %v2729_v45  ;;  %v1386_v49 = vrot.slane %v1385_v23, 2  ;;  %vm1026_vm2 = vcmp.eq.f32.partialorder %v3170_v1, %v701_v21  ;;  %vm1034_vm3 = vcmp.eq.f32.partialorder %v3212_v18, %v701_v21  ;;  %v3282_v18 = vpop.f32.mrf.mxu3 }
 0x162   :  { %v1297_v44 = vrot.slane %v1296_v4, 1  ;;  %v1393_v39 = vrot.slane %v1392_v52, 2  ;;  %v1398_v28 = vrot.slane %v1397_v56, 4  ;;  %v1154_v57 = vsel %vm1026_vm2, %v2529_v60, 16.0 }
 0x163   :  { %v1162_v26 = vsel %vm1034_vm3, %v2531_v61, 16.0  ;;  %v4258_v59 = vrot.slane %v3196_v20, 1  ;;  %v3278_v29 = vmin.f32 %v1331_v34, %v1332_v5  ;;  %v3280_v1 = vmin.f32 %v1348_v9, %v1349_v25 }
 0x164   :  { %v3284_v13 = vmin.f32 %v1385_v23, %v1386_v49  ;;  %v3289_v16 = vmin.f32 %v3201_v11, %v1283_v7  ;;  %v3291_v63 = vmin.f32 %v1289_v0, %v1290_v24  ;;  %vm1693_vm4 = vcmp.eq.f32.partialorder %v2529_v60, %v2731_v51 }
 0x165   :  { %v3276_v10 = vmin.f32 %v3196_v20, %v4258_v59  ;;  %v3295_v20 = vmin.f32 %v1154_v57, %v1162_v26  ;;  %v3297_v34 = vmin.f32 %v1296_v4, %v1297_v44  ;;  %v1819_v9 = vsel %vm1691_vm9, 1.0, %v4241_v36  ;;  %v3351_v57 = vpop.f32.mrf.mxu2 }
 0x166   :  { %v1820_v11 = vsel %vm1692_vm10, 1.0, %v4241_v36  ;;  %v3308_v0 = vmin.f32 %v1343_v46, %v1344_v55  ;;  %v3310_v17 = vmin.f32 %v1392_v52, %v1393_v39  ;;  %v3312_v5 = vmin.f32 %v1397_v56, %v1398_v28 }
 0x167   :  { %v1351_v25 = vrot.slane %v3280_v1, 2  ;;  %vm1694_vm5 = vcmp.eq.f32.partialorder %v2529_v60, %v2733_v33  ;;  %vm1695_vm6 = vcmp.eq.f32.partialorder %v2529_v60, %v3276_v10  ;;  %v1821_v48 = vsel %vm1693_vm4, 1.0, %v4241_v36 }
 0x168   :  { %v1388_v46 = vrot.slane %v3284_v13, 1  ;;  %vm1696_vm7 = vcmp.eq.f32.partialorder %v2529_v60, %v3289_v16  ;;  %vm1697_vm8 = vcmp.eq.f32.partialorder %v2529_v60, %v3291_v63  ;;  %v1947_v58 = vadd.f32 %v1820_v11, %v1819_v9 }
 0x169   :  { %v1405_v4 = vrot.slane %v3295_v20, 4  ;;  %vm1698_vm9 = vcmp.eq.f32.partialorder %v2529_v60, %v3297_v34  ;;  %v730_v3 = vmax.f32 %v3252_v42, %v3314_v31  ;;  %v737_v23 = vmax.f32 %v3254_v14, %v3316_v47  ;;  %v3361_v9 = vpop.f32.mrf.mxu3 }
 0x16a   :  { %v1822_v21 = vsel %vm1694_vm5, 1.0, %v4241_v36  ;;  %v1948_v55 = vadd.f32 %v1947_v58, %v1821_v48  ;;  %v1823_v52 = vsel %vm1695_vm6, 1.0, %v4241_v36  ;;  %vm1701_vm10 = vcmp.eq.f32.partialorder %v2531_v61, %v2731_v51 }
 0x16b   :  { %v731_v56 = vrot.slane %v730_v3, 4  ;;  %v738_v24 = vrot.slane %v737_v23, 4  ;;  %v1824_v49 = vsel %vm1696_vm7, 1.0, %v4241_v36  ;;  %v1827_v39 = vsel %vm1699_vm15, 1.0, %v4241_v36 }
 0x16c   :  { %v1949_v44 = vadd.f32 %v1948_v55, %v1822_v21  ;;  %v1828_v28 = vsel %vm1700_vm1, 1.0, %v4241_v36  ;;  %v1825_v51 = vsel %vm1697_vm8, 1.0, %v4241_v36  ;;  %v1826_v26 = vsel %vm1698_vm9, 1.0, %v4241_v36 }
 0x16d   :  { %v732_v59 = vmax.f32 %v730_v3, %v731_v56  ;;  %v739_v50 = vmax.f32 %v737_v23, %v738_v24  ;;  %vm1702_vm11 = vcmp.eq.f32.partialorder %v2531_v61, %v2733_v33  ;;  %vm1703_vm12 = vcmp.eq.f32.partialorder %v2531_v61, %v3276_v10 }
 0x16e   :  { %v1950_v11 = vadd.f32 %v1949_v44, %v1823_v52  ;;  %v1829_v45 = vsel %vm1701_vm10, 1.0, %v4241_v36  ;;  %v1956_v21 = vadd.f32 %v1828_v28, %v1827_v39  ;;  %v744_v55 = vmax.f32 %v3270_v30, %v3351_v57 }
 0x16f   :  { %v733_v48 = vrot.slane %v732_v59, 2  ;;  %v740_v58 = vrot.slane %v739_v50, 2  ;;  %vm1704_vm13 = vcmp.eq.f32.partialorder %v2531_v61, %v3289_v16  ;;  %vm1705_vm14 = vcmp.eq.f32.partialorder %v2531_v61, %v3291_v63  ;;  %v3408_v16 = vpop.f32.mrf.mxu0 }
 0x170   :  { %v1951_v27 = vadd.f32 %v1950_v11, %v1824_v49  ;;  %v751_v3 = vmax.f32 %v3282_v18, %v3361_v9  ;;  %v1957_v56 = vadd.f32 %v1956_v21, %v1829_v45  ;;  %v745_v24 = vrot.slane %v744_v55, 4 }
 0x171   :  { %v734_v23 = vmax.f32 %v732_v59, %v733_v48  ;;  %v741_v52 = vmax.f32 %v739_v50, %v740_v58  ;;  %v1830_v39 = vsel %vm1702_vm11, 1.0, %v4241_v36  ;;  %v1831_v49 = vsel %vm1703_vm12, 1.0, %v4241_v36 }
 0x172   :  { %v1952_v44 = vadd.f32 %v1951_v27, %v1825_v51  ;;  %v752_v28 = vrot.slane %v751_v3, 4  ;;  %v1958_v7 = vadd.f32 %v1957_v56, %v1830_v39  ;;  %v746_v53 = vmax.f32 %v744_v55, %v745_v24 }
 0x173   :  { %v735_v11 = vrot.slane %v734_v23, 1  ;;  %v742_v62 = vrot.slane %v741_v52, 1  ;;  %vm1707_vm15 = vcmp.eq.f32.partialorder %v2529_v60, %v2775_v40  ;;  %vm1708_vm1 = vcmp.eq.f32.partialorder %v2529_v60, %v2794_v2 }
 0x174   :  { %v3389_v27 = vmin.f32 %v3284_v13, %v1388_v46  ;;  %v1953_v33 = vadd.f32 %v1952_v44, %v1826_v26  ;;  %vm1706_vm2 = vcmp.eq.f32.partialorder %v2531_v61, %v3297_v34  ;;  %v753_v10 = vmax.f32 %v751_v3, %v752_v28 }
 0x175   :  { %v736_v51 = vmax.f32 %v734_v23, %v735_v11  ;;  %v743_v59 = vmax.f32 %v741_v52, %v742_v62  ;;  %v1959_v50 = vadd.f32 %v1958_v7, %v1831_v49  ;;  %v747_v45 = vrot.slane %v746_v53, 2  ;;  %v3410_v7 = vpop.f32.mrf.mxu1 }
 0x176   :  { %1954 = vadd.xlane.f32.xlu0 %v1953_v33  ;;  %v1832_v48 = vsel %vm1704_vm13, 1.0, %v4241_v36  ;;  %v1833_v13 = vsel %vm1705_vm14, 1.0, %v4241_v36  ;;  %v754_v46 = vrot.slane %v753_v10, 2  ;;  %v1352_v26 = vmin.f32 %v3280_v1, %v1351_v25 }
 0x177   :  { %vm1039_vm3 = vcmp.eq.f32.partialorder %v3252_v42, %v736_v51  ;;  %vm1047_vm4 = vcmp.eq.f32.partialorder %v3314_v31, %v736_v51  ;;  %vm1040_vm5 = vcmp.eq.f32.partialorder %v3254_v14, %v743_v59  ;;  %vm1048_vm6 = vcmp.eq.f32.partialorder %v3316_v47, %v743_v59 }
 0x178   :  { %v1167_v63 = vsel %vm1039_vm3, %v2529_v60, 16.0  ;;  %v1175_v62 = vsel %vm1047_vm4, %v2531_v61, 16.0  ;;  %v1168_v58 = vsel %vm1040_vm5, %v2529_v60, 16.0  ;;  %v1176_v1 = vsel %vm1048_vm6, %v2531_v61, 16.0 }
 0x179   :  { %v1439_v25 = vmin.f32 %v1167_v63, %v1175_v62  ;;  %v1446_v42 = vmin.f32 %v1168_v58, %v1176_v1  ;;  %v1960_v21 = vadd.f32 %v1959_v50, %v1832_v48  ;;  %v748_v31 = vmax.f32 %v746_v53, %v747_v45  ;;  %v3466_v45 = vpop.f32.mrf.mxu3 }
 0x17a   :  { %v3419_v14 = vmin.f32 %v3295_v20, %v1405_v4  ;;  %v755_v47 = vmax.f32 %v753_v10, %v754_v46  ;;  %v1346_v55 = vrot.slane %v3308_v0, 1  ;;  %v1353_v3 = vrot.slane %v1352_v26, 1 }
 0x17b   :  { %v1440_v23 = vrot.slane %v1439_v25, 4  ;;  %v1447_v52 = vrot.slane %v1446_v42, 4  ;;  %v1961_v56 = vadd.f32 %v1960_v21, %v1833_v13  ;;  %v749_v24 = vrot.slane %v748_v31, 1 }
 0x17c   :  { %v4259_v44 = vrot.slane %v3312_v5, 2  ;;  %v1834_v53 = vsel %vm1706_vm2, 1.0, %v4241_v36  ;;  %v756_v20 = vrot.slane %v755_v47, 1  ;;  %vm1709_vm7 = vcmp.eq.f32.partialorder %v2529_v60, %v2796_v6 }
 0x17d   :  { %v1441_v4 = vmin.f32 %v1439_v25, %v1440_v23  ;;  %v1448_v49 = vmin.f32 %v1446_v42, %v1447_v52  ;;  %v1962_v28 = vadd.f32 %v1961_v56, %v1834_v53  ;;  %v750_v11 = vmax.f32 %v748_v31, %v749_v24  ;;  %v3471_v63 = vpop.f32.mrf.mxu1 }
 0x17e   :  { %v3425_v39 = vmin.f32 %v3312_v5, %v4259_v44  ;;  %vm1715_vm8 = vcmp.eq.f32.partialorder %v2531_v61, %v2775_v40  ;;  %v757_v33 = vmax.f32 %v755_v47, %v756_v20  ;;  %v4260_v5 = vrot.slane %v3256_v15, 1 }
 0x17f   :  { %v3441_v34 = vmin.f32 %v3308_v0, %v1346_v55  ;;  %v3443_v51 = vmin.f32 %v1352_v26, %v1353_v3  ;;  %vm1716_vm9 = vcmp.eq.f32.partialorder %v2531_v61, %v2794_v2  ;;  %1963 = vadd.xlane.f32.xlu0 %v1962_v28  ;;  %vm1041_vm10 = vcmp.eq.f32.partialorder %v3270_v30, %v750_v11  ;;  %v3469_v26 = vpop.f32.mrf.mxu0 }
 0x180   :  { %v3438_v10 = vmin.f32 %v3256_v15, %v4260_v5  ;;  %vm1049_vm11 = vcmp.eq.f32.partialorder %v3351_v57, %v750_v11  ;;  %v1835_v59 = vsel %vm1707_vm15, 1.0, %v4241_v36  ;;  %v1836_v15 = vsel %vm1708_vm1, 1.0, %v4241_v36  ;;  %v3464_v57 = vpop.f32.mrf.mxu2 }
 0x181   :  { %v1169_v0 = vsel %vm1041_vm10, %v2529_v60, 16.0  ;;  %v1177_v50 = vsel %vm1049_vm11, %v2531_v61, 16.0  ;;  %vm1042_vm12 = vcmp.eq.f32.partialorder %v3282_v18, %v757_v33  ;;  %v1837_v30 = vsel %vm1709_vm7, 1.0, %v4241_v36 }
 0x182   :  { %v1442_v48 = vrot.slane %v1441_v4, 2  ;;  %v1449_v13 = vrot.slane %v1448_v49, 2  ;;  %v1453_v46 = vmin.f32 %v1169_v0, %v1177_v50  ;;  %vm1050_vm13 = vcmp.eq.f32.partialorder %v3361_v9, %v757_v33 }
 0x183   :  { %vm1710_vm14 = vcmp.eq.f32.partialorder %v2529_v60, %v2807_v38  ;;  %vm1711_vm15 = vcmp.eq.f32.partialorder %v2529_v60, %v3278_v29  ;;  %vm1712_vm1 = vcmp.eq.f32.partialorder %v2529_v60, %v3438_v10  ;;  %v1965_v18 = vadd.f32 %v1836_v15, %v1835_v59 }
 0x184   :  { %v1454_v62 = vrot.slane %v1453_v46, 4  ;;  %v1170_v58 = vsel %vm1042_vm12, %v2529_v60, 16.0  ;;  %vm1713_vm2 = vcmp.eq.f32.partialorder %v2529_v60, %v3441_v34  ;;  %vm1714_vm3 = vcmp.eq.f32.partialorder %v2529_v60, %v3443_v51 }
 0x185   :  { %v1178_v9 = vsel %vm1050_vm13, %v2531_v61, 16.0  ;;  %v1966_v1 = vadd.f32 %v1965_v18, %v1837_v30  ;;  %v786_v25 = vmax.f32 %v3408_v16, %v3469_v26  ;;  %v793_v42 = vmax.f32 %v3410_v7, %v3471_v63 }
 0x186   :  { %v3489_v21 = vmin.f32 %v1441_v4, %v1442_v48  ;;  %v3491_v31 = vmin.f32 %v1448_v49, %v1449_v13  ;;  %v1838_v47 = vsel %vm1710_vm14, 1.0, %v4241_v36  ;;  %v1839_v55 = vsel %vm1711_vm15, 1.0, %v4241_v36  ;;  %v3526_v13 = vpop.f32.mrf.mxu3 }
 0x187   :  { %v1407_v3 = vrot.slane %v3419_v14, 2  ;;  %v1967_v23 = vadd.f32 %v1966_v1, %v1838_v47  ;;  %v787_v52 = vrot.slane %v786_v25, 4  ;;  %v794_v56 = vrot.slane %v793_v42, 4 }
 0x188   :  { %v3496_v24 = vmin.f32 %v1453_v46, %v1454_v62  ;;  %v3498_v44 = vmin.f32 %v1170_v58, %v1178_v9  ;;  %v1840_v53 = vsel %vm1712_vm1, 1.0, %v4241_v36  ;;  %v1841_v20 = vsel %vm1713_vm2, 1.0, %v4241_v36  ;;  %v3524_v48 = vpop.f32.mrf.mxu2 }
 0x189   :  { %v1842_v4 = vsel %vm1714_vm3, 1.0, %v4241_v36  ;;  %v1968_v49 = vadd.f32 %v1967_v23, %v1839_v55  ;;  %v788_v28 = vmax.f32 %v786_v25, %v787_v52  ;;  %v795_v11 = vmax.f32 %v793_v42, %v794_v56 }
 0x18a   :  { %v1444_v33 = vrot.slane %v3489_v21, 1  ;;  %v1451_v5 = vrot.slane %v3491_v31, 1  ;;  %vm1717_vm4 = vcmp.eq.f32.partialorder %v2531_v61, %v2796_v6  ;;  %v1843_v59 = vsel %vm1715_vm8, 1.0, %v4241_v36 }
 0x18b   :  { %v1969_v15 = vadd.f32 %v1968_v49, %v1840_v53  ;;  %v789_v0 = vrot.slane %v788_v28, 2  ;;  %v796_v50 = vrot.slane %v795_v11, 2  ;;  %v1844_v30 = vsel %vm1716_vm9, 1.0, %v4241_v36 }
 0x18c   :  { %v1456_v46 = vrot.slane %v3496_v24, 2  ;;  %v1461_v6 = vrot.slane %v3498_v44, 4  ;;  %vm1718_vm5 = vcmp.eq.f32.partialorder %v2531_v61, %v2807_v38  ;;  %vm1719_vm6 = vcmp.eq.f32.partialorder %v2531_v61, %v3278_v29 }
 0x18d   :  { %v1970_v40 = vadd.f32 %v1969_v15, %v1841_v20  ;;  %v790_v18 = vmax.f32 %v788_v28, %v789_v0  ;;  %v797_v62 = vmax.f32 %v795_v11, %v796_v50  ;;  %v1845_v2 = vsel %vm1717_vm4, 1.0, %v4241_v36  ;;  %v3566_v50 = vpop.f32.mrf.mxu0 }
 0x18e   :  { %vm1720_vm7 = vcmp.eq.f32.partialorder %v2531_v61, %v3438_v10  ;;  %v1974_v58 = vadd.f32 %v1844_v30, %v1843_v59  ;;  %v800_v9 = vmax.f32 %v3464_v57, %v3524_v48  ;;  %v807_v1 = vmax.f32 %v3466_v45, %v3526_v13 }
 0x18f   :  { %v1971_v25 = vadd.f32 %v1970_v40, %v1842_v4  ;;  %v791_v42 = vrot.slane %v790_v18, 1  ;;  %v798_v47 = vrot.slane %v797_v62, 1  ;;  %vm1721_vm8 = vcmp.eq.f32.partialorder %v2531_v61, %v3441_v34  ;;  %v3568_v40 = vpop.f32.mrf.mxu1 }
 0x190   :  { %vm1722_vm9 = vcmp.eq.f32.partialorder %v2531_v61, %v3443_v51  ;;  %v1975_v55 = vadd.f32 %v1974_v58, %v1845_v2  ;;  %v801_v23 = vrot.slane %v800_v9, 4  ;;  %v808_v52 = vrot.slane %v807_v1, 4 }
 0x191   :  { %vm1723_vm10 = vcmp.eq.f32.partialorder %v2529_v60, %v2881_v43  ;;  %1972 = vadd.xlane.f32.xlu1 %v1971_v25  ;;  %v792_v56 = vmax.f32 %v790_v18, %v791_v42  ;;  %v799_v53 = vmax.f32 %v797_v62, %v798_v47  ;;  %v1846_v20 = vsel %vm1718_vm5, 1.0, %v4241_v36 }
 0x192   :  { %v1847_v4 = vsel %vm1719_vm6, 1.0, %v4241_v36  ;;  %vm1724_vm11 = vcmp.eq.f32.partialorder %v2529_v60, %v2886_v37  ;;  %v1976_v49 = vadd.f32 %v1975_v55, %v1846_v20  ;;  %v802_v28 = vmax.f32 %v800_v9, %v801_v23 }
 0x193   :  { %v809_v11 = vmax.f32 %v807_v1, %v808_v52  ;;  %v1408_v59 = vmin.f32 %v3419_v14, %v1407_v3  ;;  %vm1055_vm12 = vcmp.eq.f32.partialorder %v3408_v16, %v792_v56  ;;  %vm1063_vm13 = vcmp.eq.f32.partialorder %v3469_v26, %v792_v56 }
 0x194   :  { %vm1056_vm14 = vcmp.eq.f32.partialorder %v3410_v7, %v799_v53  ;;  %vm1064_vm15 = vcmp.eq.f32.partialorder %v3471_v63, %v799_v53  ;;  %v1183_v38 = vsel %vm1055_vm12, %v2529_v60, 16.0  ;;  %v1191_v29 = vsel %vm1063_vm13, %v2531_v61, 16.0 }
 0x195   :  { %v1184_v15 = vsel %vm1056_vm14, %v2529_v60, 16.0  ;;  %v1192_v0 = vsel %vm1064_vm15, %v2531_v61, 16.0  ;;  %v1495_v30 = vmin.f32 %v1183_v38, %v1191_v29  ;;  %v1977_v3 = vadd.f32 %v1976_v49, %v1847_v4  ;;  %v3620_v49 = vpop.f32.mrf.mxu2 }
 0x196   :  { %v1502_v14 = vmin.f32 %v1184_v15, %v1192_v0  ;;  %v803_v16 = vrot.slane %v802_v28, 2  ;;  %v1848_v7 = vsel %vm1720_vm7, 1.0, %v4241_v36  ;;  %v1849_v26 = vsel %vm1721_vm8, 1.0, %v4241_v36 }
 0x197   :  { %v810_v63 = vrot.slane %v809_v11, 2  ;;  %v1402_v18 = vrot.slane %v3425_v39, 1  ;;  %v1496_v62 = vrot.slane %v1495_v30, 4  ;;  %v1978_v58 = vadd.f32 %v1977_v3, %v1848_v7  ;;  %v3637_v15 = vpop.f32.mrf.mxu1 }
 0x198   :  { %v1503_v2 = vrot.slane %v1502_v14, 4  ;;  %v804_v9 = vmax.f32 %v802_v28, %v803_v16  ;;  %v3582_v1 = vmin.f32 %v3489_v21, %v1444_v33  ;;  %v3585_v10 = vmin.f32 %v3498_v44, %v1461_v6 }
 0x199   :  { %v811_v25 = vmax.f32 %v809_v11, %v810_v63  ;;  %v1409_v42 = vrot.slane %v1408_v59, 1  ;;  %v1497_v47 = vmin.f32 %v1495_v30, %v1496_v62  ;;  %v1979_v55 = vadd.f32 %v1978_v58, %v1849_v26 }
 0x19a   :  { %v1504_v34 = vmin.f32 %v1502_v14, %v1503_v2  ;;  %v805_v23 = vrot.slane %v804_v9, 1  ;;  %v3588_v52 = vmin.f32 %v3496_v24, %v1456_v46  ;;  %v1850_v56 = vsel %vm1722_vm9, 1.0, %v4241_v36 }
 0x19b   :  { %v812_v53 = vrot.slane %v811_v25, 1  ;;  %v4261_v21 = vrot.slane %v3310_v17, 1  ;;  %v1980_v33 = vadd.f32 %v1979_v55, %v1850_v56  ;;  %v3600_v20 = vmin.f32 %v3425_v39, %v1402_v18 }
 0x19c   :  { %v806_v6 = vmax.f32 %v804_v9, %v805_v23  ;;  %vm1725_vm1 = vcmp.eq.f32.partialorder %v2529_v60, %v2897_v54  ;;  %vm1731_vm2 = vcmp.eq.f32.partialorder %v2531_v61, %v2881_v43  ;;  %vm1732_vm3 = vcmp.eq.f32.partialorder %v2531_v61, %v2886_v37 }
 0x19d   :  { %v3597_v44 = vmin.f32 %v3310_v17, %v4261_v21  ;;  %v1498_v51 = vrot.slane %v1497_v47, 2  ;;  %v813_v24 = vmax.f32 %v811_v25, %v812_v53  ;;  %v3608_v46 = vmin.f32 %v1408_v59, %v1409_v42  ;;  %1981 = vadd.xlane.f32.xlu1 %v1980_v33  ;;  %v3626_v59 = vpop.f32.mrf.mxu3 }
 0x19e   :  { %v1851_v17 = vsel %vm1723_vm10, 1.0, %v4241_v36  ;;  %v1505_v39 = vrot.slane %v1504_v34, 2  ;;  %vm1057_vm4 = vcmp.eq.f32.partialorder %v3464_v57, %v806_v6  ;;  %vm1065_vm5 = vcmp.eq.f32.partialorder %v3524_v48, %v806_v6  ;;  %v3628_v57 = vpop.f32.mrf.mxu0 }
 0x19f   :  { %v1852_v4 = vsel %vm1724_vm11, 1.0, %v4241_v36  ;;  %v1185_v28 = vsel %vm1057_vm4, %v2529_v60, 16.0  ;;  %v1193_v11 = vsel %vm1065_vm5, %v2531_v61, 16.0  ;;  %vm1058_vm6 = vcmp.eq.f32.partialorder %v3466_v45, %v813_v24 }
 0x1a0   :  { %vm1066_vm7 = vcmp.eq.f32.partialorder %v3526_v13, %v813_v24  ;;  %v1463_v48 = vrot.slane %v3585_v10, 2  ;;  %v1509_v38 = vmin.f32 %v1185_v28, %v1193_v11  ;;  %vm1726_vm8 = vcmp.eq.f32.partialorder %v2529_v60, %v2901_v8  ;;  %v3681_v24 = vpop.f32.mrf.mxu2 }
 0x1a1   :  { %v1853_v29 = vsel %vm1725_vm1, 1.0, %v4241_v36  ;;  %v3639_v45 = vmin.f32 %v1497_v47, %v1498_v51  ;;  %vm1727_vm9 = vcmp.eq.f32.partialorder %v2529_v60, %v3389_v27  ;;  %vm1728_vm10 = vcmp.eq.f32.partialorder %v2529_v60, %v3597_v44 }
 0x1a2   :  { %v1983_v13 = vadd.f32 %v1852_v4, %v1851_v17  ;;  %v3645_v0 = vmin.f32 %v1504_v34, %v1505_v39  ;;  %v1186_v30 = vsel %vm1058_vm6, %v2529_v60, 16.0  ;;  %v1194_v14 = vsel %vm1066_vm7, %v2531_v61, 16.0 }
 0x1a3   :  { %v842_v3 = vmax.f32 %v3566_v50, %v3628_v57  ;;  %vm1729_vm11 = vcmp.eq.f32.partialorder %v2529_v60, %v3600_v20  ;;  %vm1730_vm12 = vcmp.eq.f32.partialorder %v2529_v60, %v3608_v46  ;;  %v849_v7 = vmax.f32 %v3568_v40, %v3637_v15 }
 0x1a4   :  { %v1984_v16 = vadd.f32 %v1983_v13, %v1853_v29  ;;  %v1510_v26 = vrot.slane %v1509_v38, 4  ;;  %v1854_v63 = vsel %vm1726_vm8, 1.0, %v4241_v36  ;;  %v1855_v18 = vsel %vm1727_vm9, 1.0, %v4241_v36 }
 0x1a5   :  { %v843_v62 = vrot.slane %v842_v3, 4  ;;  %v3662_v2 = vmin.f32 %v1186_v30, %v1194_v14  ;;  %v1856_v58 = vsel %vm1728_vm10, 1.0, %v4241_v36  ;;  %v850_v25 = vrot.slane %v849_v7, 4 }
 0x1a6   :  { %v1985_v9 = vadd.f32 %v1984_v16, %v1854_v63  ;;  %v1500_v42 = vrot.slane %v3639_v45, 1  ;;  %v1507_v47 = vrot.slane %v3645_v0, 1  ;;  %v1857_v34 = vsel %vm1729_vm11, 1.0, %v4241_v36 }
 0x1a7   :  { %v844_v55 = vmax.f32 %v842_v3, %v843_v62  ;;  %v1858_v23 = vsel %vm1730_vm12, 1.0, %v4241_v36  ;;  %v851_v53 = vmax.f32 %v849_v7, %v850_v25  ;;  %vm1733_vm13 = vcmp.eq.f32.partialorder %v2531_v61, %v2897_v54  ;;  %v3686_v54 = vpop.f32.mrf.mxu3 }
 0x1a8   :  { %v1986_v56 = vadd.f32 %v1985_v9, %v1855_v18  ;;  %v3671_v21 = vmin.f32 %v1509_v38, %v1510_v26  ;;  %v1859_v6 = vsel %vm1731_vm2, 1.0, %v4241_v36  ;;  %v1860_v51 = vsel %vm1732_vm3, 1.0, %v4241_v36 }
 0x1a9   :  { %v845_v33 = vrot.slane %v844_v55, 2  ;;  %v1517_v17 = vrot.slane %v3662_v2, 4  ;;  %v852_v4 = vrot.slane %v851_v53, 2  ;;  %vm1734_vm14 = vcmp.eq.f32.partialorder %v2531_v61, %v2901_v8 }
 0x1aa   :  { %v1987_v39 = vadd.f32 %v1986_v56, %v1856_v58  ;;  %vm1735_vm15 = vcmp.eq.f32.partialorder %v2531_v61, %v3389_v27  ;;  %vm1736_vm1 = vcmp.eq.f32.partialorder %v2531_v61, %v3597_v44  ;;  %v1861_v43 = vsel %vm1733_vm13, 1.0, %v4241_v36 }
 0x1ab   :  { %v846_v28 = vmax.f32 %v844_v55, %v845_v33  ;;  %v853_v11 = vmax.f32 %v851_v53, %v852_v4  ;;  %v1992_v38 = vadd.f32 %v1860_v51, %v1859_v6  ;;  %v856_v29 = vmax.f32 %v3620_v49, %v3681_v24 }
 0x1ac   :  { %v1988_v37 = vadd.f32 %v1987_v39, %v1857_v34  ;;  %v1512_v13 = vrot.slane %v3671_v21, 2  ;;  %vm1737_vm2 = vcmp.eq.f32.partialorder %v2531_v61, %v3600_v20  ;;  %v863_v14 = vmax.f32 %v3626_v59, %v3686_v54 }
 0x1ad   :  { %v847_v30 = vrot.slane %v846_v28, 1  ;;  %v854_v16 = vrot.slane %v853_v11, 1  ;;  %v1993_v7 = vadd.f32 %v1992_v38, %v1861_v43  ;;  %v857_v26 = vrot.slane %v856_v29, 4 }
 0x1ae   :  { %v1989_v3 = vadd.f32 %v1988_v37, %v1858_v23  ;;  %v1862_v18 = vsel %vm1734_vm14, 1.0, %v4241_v36  ;;  %v1863_v62 = vsel %vm1735_vm15, 1.0, %v4241_v36  ;;  %v864_v58 = vrot.slane %v863_v14, 4 }
 0x1af   :  { %v848_v63 = vmax.f32 %v846_v28, %v847_v30  ;;  %vm1747_vm3 = vcmp.eq.f32.partialorder %v2531_v61, %v2907_v32  ;;  %v855_v9 = vmax.f32 %v853_v11, %v854_v16  ;;  %v1864_v25 = vsel %vm1736_vm1, 1.0, %v4241_v36 }
 0x1b0   :  { %1990 = vadd.xlane.f32.xlu2 %v1989_v3  ;;  %v1994_v34 = vadd.f32 %v1993_v7, %v1862_v18  ;;  %v858_v55 = vmax.f32 %v856_v29, %v857_v26  ;;  %vm1748_vm4 = vcmp.eq.f32.partialorder %v2531_v61, %v2909_v22  ;;  %v865_v8 = vmax.f32 %v863_v14, %v864_v58  ;;  %v3747_v3 = vpop.f32.mrf.mxu0  ;;  %v3752_v26 = vpop.f32.mrf.mxu1  ;;  %v4262_v58 = vld [vmem:[#allocation5_spill] sm:$0xff] }
 0x1b1   :  { %vm1071_vm5 = vcmp.eq.f32.partialorder %v3566_v50, %v848_v63  ;;  %vm1079_vm6 = vcmp.eq.f32.partialorder %v3628_v57, %v848_v63  ;;  %v1464_v27 = vmin.f32 %v3585_v10, %v1463_v48  ;;  %vm1072_vm7 = vcmp.eq.f32.partialorder %v3568_v40, %v855_v9 }
 0x1b2   :  { %v1199_v23 = vsel %vm1071_vm5, %v2529_v60, 16.0  ;;  %v1207_v56 = vsel %vm1079_vm6, %v2531_v61, 16.0  ;;  %vm1080_vm8 = vcmp.eq.f32.partialorder %v3637_v15, %v855_v9  ;;  %v1200_v53 = vsel %vm1072_vm7, %v2529_v60, 16.0 }
 0x1b3   :  { %v1551_v44 = vmin.f32 %v1199_v23, %v1207_v56  ;;  %v1208_v50 = vsel %vm1080_vm8, %v2531_v61, 16.0  ;;  %v1995_v33 = vadd.f32 %v1994_v34, %v1863_v62  ;;  %v1865_v10 = vsel %vm1737_vm2, 1.0, %v4241_v36 }
 0x1b4   :  { %v1558_v57 = vmin.f32 %v1200_v53, %v1208_v50  ;;  %v859_v48 = vrot.slane %v858_v55, 2  ;;  %v866_v6 = vrot.slane %v865_v8, 2  ;;  %vm1738_vm9 = vcmp.eq.f32.partialorder %v2531_v61, %v3608_v46 }
 0x1b5   :  { %v1552_v51 = vrot.slane %v1551_v44, 4  ;;  %v1996_v40 = vadd.f32 %v1995_v33, %v1864_v25  ;;  %v1458_v15 = vrot.slane %v3588_v52, 1  ;;  %v1465_v43 = vrot.slane %v1464_v27, 1 }
 0x1b6   :  { %v1559_v39 = vrot.slane %v1558_v57, 4  ;;  %v860_v4 = vmax.f32 %v858_v55, %v859_v48  ;;  %v867_v28 = vmax.f32 %v865_v8, %v866_v6  ;;  %vm1739_vm10 = vcmp.eq.f32.partialorder %v2529_v60, %v2907_v32 }
 0x1b7   :  { %vm1740_vm11 = vcmp.eq.f32.partialorder %v2529_v60, %v2909_v22  ;;  %v3741_v20 = vmin.f32 %v3639_v45, %v1500_v42  ;;  %v3744_v46 = vmin.f32 %v3662_v2, %v1517_v17  ;;  %v1553_v37 = vmin.f32 %v1551_v44, %v1552_v51  ;;  %v3762_v42 = vpop.f32.mrf.mxu2 }
 0x1b8   :  { %v1997_v11 = vadd.f32 %v1996_v40, %v1865_v10  ;;  %v1560_v38 = vmin.f32 %v1558_v57, %v1559_v39  ;;  %v1866_v29 = vsel %vm1738_vm9, 1.0, %v4241_v36  ;;  %v861_v30 = vrot.slane %v860_v4, 1  ;;  %v3822_v10 = vpop.f32.mrf.mxu0  ;;  %v3827_v40 = vpop.f32.mrf.mxu1 }
 0x1b9   :  { %v868_v14 = vrot.slane %v867_v28, 1  ;;  %v3750_v16 = vmin.f32 %v3671_v21, %v1512_v13  ;;  %v3757_v45 = vmin.f32 %v3491_v31, %v1451_v5  ;;  %v3760_v2 = vmin.f32 %v3588_v52, %v1458_v15  ;;  %v3768_v21 = vpop.f32.mrf.mxu3 }
 0x1ba   :  { %v1998_v7 = vadd.f32 %v1997_v11, %v1866_v29  ;;  %v862_v17 = vmax.f32 %v860_v4, %v861_v30  ;;  %v3764_v18 = vmin.f32 %v1464_v27, %v1465_v43  ;;  %vm1749_vm12 = vcmp.eq.f32.partialorder %v2531_v61, %v2914_v12 }
 0x1bb   :  { %v869_v63 = vmax.f32 %v867_v28, %v868_v14  ;;  %v1554_v13 = vrot.slane %v1553_v37, 2  ;;  %v1561_v62 = vrot.slane %v1560_v38, 2  ;;  %vm1750_vm13 = vcmp.eq.f32.partialorder %v2531_v61, %v4262_v58 }
 0x1bc   :  { %1999 = vadd.xlane.f32.xlu2 %v1998_v7  ;;  %v1875_v31 = vsel %vm1747_vm3, 1.0, %v4241_v36  ;;  %vm1073_vm14 = vcmp.eq.f32.partialorder %v3620_v49, %v862_v17  ;;  %vm1081_vm15 = vcmp.eq.f32.partialorder %v3681_v24, %v862_v17  ;;  %v1876_v5 = vsel %vm1748_vm4, 1.0, %v4241_v36  ;;  %v4263_v17 = vld [vmem:[#allocation8_spill] sm:$0xff] }
 0x1bd   :  { %vm1074_vm1 = vcmp.eq.f32.partialorder %v3626_v59, %v869_v63  ;;  %v1201_v52 = vsel %vm1073_vm14, %v2529_v60, 16.0  ;;  %v1209_v9 = vsel %vm1081_vm15, %v2531_v61, 16.0  ;;  %vm1082_vm2 = vcmp.eq.f32.partialorder %v3686_v54, %v869_v63 }
 0x1be   :  { %vm1751_vm3 = vcmp.eq.f32.partialorder %v2531_v61, %v3582_v1  ;;  %v1202_v49 = vsel %vm1074_vm1, %v2529_v60, 16.0  ;;  %v1210_v24 = vsel %vm1082_vm2, %v2531_v61, 16.0  ;;  %vm1752_vm5 = vcmp.eq.f32.partialorder %v2531_v61, %v3757_v45 }
 0x1bf   :  { %v1877_v59 = vsel %vm1749_vm12, 1.0, %v4241_v36  ;;  %v3796_v25 = vmin.f32 %v1553_v37, %v1554_v13  ;;  %v3798_v34 = vmin.f32 %v1560_v38, %v1561_v62  ;;  %vm1753_vm4 = vcmp.eq.f32.partialorder %v2531_v61, %v3760_v2  ;;  %v3829_v15 = vpop.f32.mrf.mxu2 }
 0x1c0   :  { %v2010_v54 = vadd.f32 %v1876_v5, %v1875_v31  ;;  %v1519_v55 = vrot.slane %v3744_v46, 2  ;;  %v1565_v8 = vmin.f32 %v1201_v52, %v1209_v9  ;;  %vm1754_vm6 = vcmp.eq.f32.partialorder %v2531_v61, %v3764_v18 }
 0x1c1   :  { %v1878_v27 = vsel %vm1750_vm13, 1.0, %v4241_v36  ;;  %v1572_v23 = vmin.f32 %v1202_v49, %v1210_v24  ;;  %v1879_v56 = vsel %vm1751_vm3, 1.0, %v4241_v36  ;;  %vm1741_vm7 = vcmp.eq.f32.partialorder %v2529_v60, %v2914_v12  ;;  %v3836_v39 = vpop.f32.mrf.mxu3 }
 0x1c2   :  { %v2011_v44 = vadd.f32 %v2010_v54, %v1877_v59  ;;  %v1880_v53 = vsel %vm1752_vm5, 1.0, %v4241_v36  ;;  %v1881_v50 = vsel %vm1753_vm4, 1.0, %v4241_v36  ;;  %v1867_v33 = vsel %vm1739_vm10, 1.0, %v4241_v36 }
 0x1c3   :  { %v1868_v57 = vsel %vm1740_vm11, 1.0, %v4241_v36  ;;  %v1556_v48 = vrot.slane %v3796_v25, 1  ;;  %v1563_v12 = vrot.slane %v3798_v34, 1  ;;  %v1882_v6 = vsel %vm1754_vm6, 1.0, %v4241_v36 }
 0x1c4   :  { %v2012_v51 = vadd.f32 %v2011_v44, %v1878_v27  ;;  %v1566_v32 = vrot.slane %v1565_v8, 4  ;;  %vm1742_vm8 = vcmp.eq.f32.partialorder %v2529_v60, %v4262_v58  ;;  %vm1743_vm9 = vcmp.eq.f32.partialorder %v2529_v60, %v3582_v1 }
 0x1c5   :  { %v1869_v22 = vsel %vm1741_vm7, 1.0, %v4241_v36  ;;  %v1573_v4 = vrot.slane %v1572_v23, 4  ;;  %vm1744_vm10 = vcmp.eq.f32.partialorder %v2529_v60, %v3757_v45  ;;  %v2001_v43 = vadd.f32 %v1868_v57, %v1867_v33 }
 0x1c6   :  { %v2013_v28 = vadd.f32 %v2012_v51, %v1879_v56  ;;  %vm1745_vm11 = vcmp.eq.f32.partialorder %v2529_v60, %v3760_v2  ;;  %v898_v37 = vmax.f32 %v3747_v3, %v3822_v10  ;;  %v905_v11 = vmax.f32 %v3752_v26, %v3827_v40 }
 0x1c7   :  { %v912_v38 = vmax.f32 %v3762_v42, %v3829_v15  ;;  %v1870_v30 = vsel %vm1742_vm8, 1.0, %v4241_v36  ;;  %v2002_v14 = vadd.f32 %v2001_v43, %v1869_v22  ;;  %v919_v7 = vmax.f32 %v3768_v21, %v3836_v39 }
 0x1c8   :  { %v2014_v29 = vadd.f32 %v2013_v28, %v1880_v53  ;;  %vm1765_vm12 = vcmp.eq.f32.partialorder %v2531_v61, %v4263_v17  ;;  %v1871_v63 = vsel %vm1743_vm9, 1.0, %v4241_v36  ;;  %v899_v13 = vrot.slane %v898_v37, 4 }
 0x1c9   :  { %v906_v62 = vrot.slane %v905_v11, 4  ;;  %v913_v58 = vrot.slane %v912_v38, 4  ;;  %vm1746_vm13 = vcmp.eq.f32.partialorder %v2529_v60, %v3764_v18  ;;  %v2003_v5 = vadd.f32 %v2002_v14, %v1870_v30 }
 0x1ca   :  { %v2015_v31 = vadd.f32 %v2014_v29, %v1881_v50  ;;  %v920_v52 = vrot.slane %v919_v7, 4  ;;  %v900_v9 = vmax.f32 %v898_v37, %v899_v13  ;;  %v1520_v59 = vmin.f32 %v3744_v46, %v1519_v55 }
 0x1cb   :  { %v907_v49 = vmax.f32 %v905_v11, %v906_v62  ;;  %v914_v24 = vmax.f32 %v912_v38, %v913_v58  ;;  %v1872_v1 = vsel %vm1744_vm10, 1.0, %v4241_v36  ;;  %v2004_v27 = vadd.f32 %v2003_v5, %v1871_v63  ;;  %v3903_v5 = vpop.f32.mrf.mxu1 }
 0x1cc   :  { %v2016_v54 = vadd.f32 %v2015_v31, %v1882_v6  ;;  %v921_v56 = vmax.f32 %v919_v7, %v920_v52  ;;  %v1873_v44 = vsel %vm1745_vm11, 1.0, %v4241_v36  ;;  %v901_v53 = vrot.slane %v900_v9, 2  ;;  %v3901_v31 = vpop.f32.mrf.mxu0 }
 0x1cd   :  { %v908_v50 = vrot.slane %v907_v49, 2  ;;  %v915_v33 = vrot.slane %v914_v24, 2  ;;  %v3868_v57 = vmin.f32 %v1565_v8, %v1566_v32  ;;  %v2005_v46 = vadd.f32 %v2004_v27, %v1872_v1 }
 0x1ce   :  { %2017 = vadd.xlane.f32.xlu1 %v2016_v54  ;;  %v922_v55 = vrot.slane %v921_v56, 2  ;;  %v1514_v6 = vrot.slane %v3750_v16, 1  ;;  %v902_v51 = vmax.f32 %v900_v9, %v901_v53  ;;  %v1521_v28 = vrot.slane %v1520_v59, 1 }
 0x1cf   :  { %v909_v45 = vmax.f32 %v907_v49, %v908_v50  ;;  %v916_v22 = vmax.f32 %v914_v24, %v915_v33  ;;  %v3871_v43 = vmin.f32 %v1572_v23, %v1573_v4  ;;  %v1874_v2 = vsel %vm1746_vm13, 1.0, %v4241_v36  ;;  %v4264_v4 = vld [vmem:[#allocation11_spill] sm:$0xff] }
 0x1d0   :  { %v2006_v37 = vadd.f32 %v2005_v46, %v1873_v44  ;;  %v923_v11 = vmax.f32 %v921_v56, %v922_v55  ;;  %v903_v8 = vrot.slane %v902_v51, 1  ;;  %v3880_v29 = vmin.f32 %v3645_v0, %v1507_v47  ;;  %v4265_v47 = vld [vmem:[#allocation7_spill] sm:$0xff] }
 0x1d1   :  { %v910_v32 = vrot.slane %v909_v45, 1  ;;  %v917_v38 = vrot.slane %v916_v22, 1  ;;  %v3883_v23 = vmin.f32 %v3750_v16, %v1514_v6  ;;  %vm1766_vm14 = vcmp.eq.f32.partialorder %v2531_v61, %v4264_v4  ;;  %v4266_v16 = vld [vmem:[#allocation10_spill] sm:$0xff] }
 0x1d2   :  { %v2007_v30 = vadd.f32 %v2006_v37, %v1874_v2  ;;  %v924_v14 = vrot.slane %v923_v11, 1  ;;  %v904_v18 = vmax.f32 %v902_v51, %v903_v8  ;;  %v3887_v13 = vmin.f32 %v1520_v59, %v1521_v28 }
 0x1d3   :  { %v911_v7 = vmax.f32 %v909_v45, %v910_v32  ;;  %v918_v63 = vmax.f32 %v916_v22, %v917_v38  ;;  %vm1767_vm15 = vcmp.eq.f32.partialorder %v2531_v61, %v3741_v20  ;;  %v1893_v0 = vsel %vm1765_vm12, 1.0, %v4241_v36 }
 0x1d4   :  { %2008 = vadd.xlane.f32.xlu0 %v2007_v30  ;;  %v925_v62 = vmax.f32 %v923_v11, %v924_v14  ;;  %v2028_v58 = vadd.f32 %v4266_v16, %v4265_v47  ;;  %vm1087_vm1 = vcmp.eq.f32.partialorder %v3747_v3, %v904_v18  ;;  %vm1095_vm2 = vcmp.eq.f32.partialorder %v3822_v10, %v904_v18  ;;  %v3911_v10 = vpop.f32.mrf.mxu2  ;;  %v3958_v11 = vpop.f32.mrf.mxu1  ;;  %v4268_v47 = vld [vmem:[#allocation9_spill] sm:$0xff] }
 0x1d5   :  { %vm1088_vm3 = vcmp.eq.f32.partialorder %v3752_v26, %v911_v7  ;;  %vm1096_vm5 = vcmp.eq.f32.partialorder %v3827_v40, %v911_v7  ;;  %vm1757_vm4 = vcmp.eq.f32.partialorder %v2529_v60, %v4263_v17  ;;  %v1215_v52 = vsel %vm1087_vm1, %v2529_v60, 16.0  ;;  %v3913_v26 = vpop.f32.mrf.mxu3 }
 0x1d6   :  { %v1223_v9 = vsel %vm1095_vm2, %v2531_v61, 16.0  ;;  %v1216_v49 = vsel %vm1088_vm3, %v2529_v60, 16.0  ;;  %v1224_v3 = vsel %vm1096_vm5, %v2531_v61, 16.0  ;;  %vm1089_vm6 = vcmp.eq.f32.partialorder %v3762_v42, %v918_v63 }
 0x1d7   :  { %v1607_v40 = vmin.f32 %v1215_v52, %v1223_v9  ;;  %v1614_v24 = vmin.f32 %v1216_v49, %v1224_v3  ;;  %vm1097_vm7 = vcmp.eq.f32.partialorder %v3829_v15, %v918_v63  ;;  %v1217_v59 = vsel %vm1089_vm6, %v2529_v60, 16.0  ;;  %v4269_v3 = vld [vmem:[#allocation16_spill] sm:$0xff] }
 0x1d8   :  { %v1225_v54 = vsel %vm1097_vm7, %v2531_v61, 16.0  ;;  %vm1090_vm8 = vcmp.eq.f32.partialorder %v3768_v21, %v925_v62  ;;  %vm1098_vm9 = vcmp.eq.f32.partialorder %v3836_v39, %v925_v62  ;;  %v1568_v1 = vrot.slane %v3868_v57, 2 }
 0x1d9   :  { %v1608_v27 = vrot.slane %v1607_v40, 4  ;;  %v1615_v56 = vrot.slane %v1614_v24, 4  ;;  %v1621_v44 = vmin.f32 %v1217_v59, %v1225_v54  ;;  %v1218_v53 = vsel %vm1090_vm8, %v2529_v60, 16.0 }
 0x1da   :  { %v1226_v50 = vsel %vm1098_vm9, %v2531_v61, 16.0  ;;  %vm1768_vm10 = vcmp.eq.f32.partialorder %v2531_v61, %v3880_v29  ;;  %v2029_v42 = vadd.f32 %v2028_v58, %v1893_v0  ;;  %vm1769_vm11 = vcmp.eq.f32.partialorder %v2531_v61, %v3883_v23  ;;  %v4267_v0 = vld [vmem:[#allocation6_spill] sm:$0xff] }
 0x1db   :  { %v1609_v15 = vmin.f32 %v1607_v40, %v1608_v27  ;;  %v1894_v21 = vsel %vm1766_vm14, 1.0, %v4241_v36  ;;  %v1895_v39 = vsel %vm1767_vm15, 1.0, %v4241_v36  ;;  %v3939_v33 = vmin.f32 %v3796_v25, %v1556_v48 }
 0x1dc   :  { %v1616_v46 = vmin.f32 %v1614_v24, %v1615_v56  ;;  %vm1770_vm12 = vcmp.eq.f32.partialorder %v2531_v61, %v3887_v13  ;;  %v2030_v55 = vadd.f32 %v2029_v42, %v1894_v21  ;;  %v3944_v6 = vmin.f32 %v3868_v57, %v1568_v1  ;;  %v3956_v57 = vpop.f32.mrf.mxu0  ;;  %v3964_v38 = vpop.f32.mrf.mxu2 }
 0x1dd   :  { %v1575_v51 = vrot.slane %v3871_v43, 2  ;;  %v1622_v45 = vrot.slane %v1621_v44, 4  ;;  %v1628_v22 = vmin.f32 %v1218_v53, %v1226_v50  ;;  %v1896_v28 = vsel %vm1768_vm10, 1.0, %v4241_v36  ;;  %v3966_v30 = vpop.f32.mrf.mxu3 }
 0x1de   :  { %v1897_v2 = vsel %vm1769_vm11, 1.0, %v4241_v36  ;;  %v2031_v37 = vadd.f32 %v2030_v55, %v1895_v39  ;;  %vm1758_vm13 = vcmp.eq.f32.partialorder %v2529_v60, %v4264_v4  ;;  %v1610_v25 = vrot.slane %v1609_v15, 2 }
 0x1df   :  { %v1898_v48 = vsel %vm1770_vm12, 1.0, %v4241_v36  ;;  %vm1759_vm14 = vcmp.eq.f32.partialorder %v2529_v60, %v3741_v20  ;;  %vm1760_vm15 = vcmp.eq.f32.partialorder %v2529_v60, %v3880_v29  ;;  %v1617_v8 = vrot.slane %v1616_v46, 2 }
 0x1e0   :  { %v2032_v32 = vadd.f32 %v2031_v37, %v1896_v28  ;;  %vm1761_vm1 = vcmp.eq.f32.partialorder %v2529_v60, %v3883_v23  ;;  %vm1762_vm2 = vcmp.eq.f32.partialorder %v2529_v60, %v3887_v13  ;;  %v3968_v14 = vmin.f32 %v1621_v44, %v1622_v45 }
 0x1e1   :  { %v1629_v18 = vrot.slane %v1628_v22, 4  ;;  %v1885_v7 = vsel %vm1757_vm4, 1.0, %v4241_v36  ;;  %v1886_v63 = vsel %vm1758_vm13, 1.0, %v4241_v36  ;;  %v2019_v16 = vadd.f32 %v4268_v47, %v4267_v0  ;;  %v4270_v0 = vld [vmem:[#allocation17_spill] sm:$0xff] }
 0x1e2   :  { %v2033_v62 = vadd.f32 %v2032_v32, %v1897_v2  ;;  %v954_v58 = vmax.f32 %v3901_v31, %v3956_v57  ;;  %v961_v52 = vmax.f32 %v3903_v5, %v3958_v11  ;;  %v3984_v9 = vmin.f32 %v1609_v15, %v1610_v25 }
 0x1e3   :  { %v1887_v17 = vsel %vm1759_vm14, 1.0, %v4241_v36  ;;  %v968_v4 = vmax.f32 %v3911_v10, %v3964_v38  ;;  %v975_v49 = vmax.f32 %v3913_v26, %v3966_v30  ;;  %vm1781_vm3 = vcmp.eq.f32.partialorder %v2531_v61, %v4269_v3 }
 0x1e4   :  { %v2034_v40 = vadd.f32 %v2033_v62, %v1898_v48  ;;  %v2020_v24 = vadd.f32 %v2019_v16, %v1885_v7  ;;  %v955_v59 = vrot.slane %v954_v58, 4  ;;  %v962_v54 = vrot.slane %v961_v52, 4 }
 0x1e5   :  { %v3996_v1 = vmin.f32 %v1616_v46, %v1617_v8  ;;  %v1624_v27 = vrot.slane %v3968_v14, 2  ;;  %v969_v56 = vrot.slane %v968_v4, 4  ;;  %v976_v20 = vrot.slane %v975_v49, 4 }
 0x1e6   :  { %2035 = vadd.xlane.f32.xlu0 %v2034_v40  ;;  %v2021_v44 = vadd.f32 %v2020_v24, %v1886_v63  ;;  %v956_v53 = vmax.f32 %v954_v58, %v955_v59  ;;  %v963_v50 = vmax.f32 %v961_v52, %v962_v54  ;;  %v1576_v42 = vmin.f32 %v3871_v43, %v1575_v51  ;;  %v4271_v24 = vld [vmem:[#allocation13_spill] sm:$0xff]  ;;  %v4272_v59 = vld [vmem:[#allocation15_spill] sm:$0xff] }
 0x1e7   :  { %v4000_v15 = vmin.f32 %v1628_v22, %v1629_v18  ;;  %v1888_v21 = vsel %vm1760_vm15, 1.0, %v4241_v36  ;;  %v970_v39 = vmax.f32 %v968_v4, %v969_v56  ;;  %v977_v46 = vmax.f32 %v975_v49, %v976_v20 }
 0x1e8   :  { %v1889_v55 = vsel %vm1761_vm1, 1.0, %v4241_v36  ;;  %v2022_v45 = vadd.f32 %v2021_v44, %v1887_v17  ;;  %v957_v28 = vrot.slane %v956_v53, 2  ;;  %v964_v2 = vrot.slane %v963_v50, 2 }
 0x1e9   :  { %v1890_v43 = vsel %vm1762_vm2, 1.0, %v4241_v36  ;;  %v971_v51 = vrot.slane %v970_v39, 2  ;;  %v978_v22 = vrot.slane %v977_v46, 2  ;;  %v1570_v29 = vrot.slane %v3944_v6, 1 }
 0x1ea   :  { %v2023_v37 = vadd.f32 %v2022_v45, %v1888_v21  ;;  %v958_v25 = vmax.f32 %v956_v53, %v957_v28  ;;  %v965_v48 = vmax.f32 %v963_v50, %v964_v2  ;;  %v1577_v8 = vrot.slane %v1576_v42, 1 }
 0x1eb   :  { %v1612_v32 = vrot.slane %v3984_v9, 1  ;;  %v972_v23 = vmax.f32 %v970_v39, %v971_v51  ;;  %v979_v18 = vmax.f32 %v977_v46, %v978_v22  ;;  %v4019_v7 = vmin.f32 %v3798_v34, %v1563_v12 }
 0x1ec   :  { %v2024_v63 = vadd.f32 %v2023_v37, %v1889_v55  ;;  %v959_v13 = vrot.slane %v958_v25, 1  ;;  %v966_v62 = vrot.slane %v965_v48, 1  ;;  %vm1782_vm5 = vcmp.eq.f32.partialorder %v2531_v61, %v4270_v0 }
 0x1ed   :  { %v973_v47 = vrot.slane %v972_v23, 1  ;;  %v980_v16 = vrot.slane %v979_v18, 1  ;;  %v4024_v58 = vmin.f32 %v3944_v6, %v1570_v29  ;;  %vm1783_vm4 = vcmp.eq.f32.partialorder %v2531_v61, %v3939_v33 }
 0x1ee   :  { %v2025_v52 = vadd.f32 %v2024_v63, %v1890_v43  ;;  %v960_v17 = vmax.f32 %v958_v25, %v959_v13  ;;  %v967_v4 = vmax.f32 %v965_v48, %v966_v62  ;;  %v4028_v49 = vmin.f32 %v1576_v42, %v1577_v8 }
 0x1ef   :  { %v974_v34 = vmax.f32 %v972_v23, %v973_v47  ;;  %v981_v12 = vmax.f32 %v979_v18, %v980_v16  ;;  %v1909_v40 = vsel %vm1781_vm3, 1.0, %v4241_v36  ;;  %v2046_v54 = vadd.f32 %v4272_v59, %v4271_v24  ;;  %v4274_v16 = vld [vmem:[#allocation12_spill] sm:$0xff] }
 0x1f0   :  { %2026 = vadd.xlane.f32.xlu2 %v2025_v52  ;;  %vm1103_vm6 = vcmp.eq.f32.partialorder %v3901_v31, %v960_v17  ;;  %vm1111_vm7 = vcmp.eq.f32.partialorder %v3956_v57, %v960_v17  ;;  %vm1104_vm8 = vcmp.eq.f32.partialorder %v3903_v5, %v967_v4  ;;  %vm1112_vm9 = vcmp.eq.f32.partialorder %v3958_v11, %v967_v4  ;;  %v4275_v52 = vld [vmem:[#allocation14_spill] sm:$0xff] }
 0x1f1   :  { %vm1773_vm10 = vcmp.eq.f32.partialorder %v2529_v60, %v4269_v3  ;;  %v1231_v6 = vsel %vm1103_vm6, %v2529_v60, 16.0  ;;  %v1239_v56 = vsel %vm1111_vm7, %v2531_v61, 16.0  ;;  %v1232_v20 = vsel %vm1104_vm8, %v2529_v60, 16.0 }
 0x1f2   :  { %v1240_v44 = vsel %vm1112_vm9, %v2531_v61, 16.0  ;;  %v1663_v53 = vmin.f32 %v1231_v6, %v1239_v56  ;;  %vm1105_vm11 = vcmp.eq.f32.partialorder %v3911_v10, %v974_v34  ;;  %vm1113_vm12 = vcmp.eq.f32.partialorder %v3964_v38, %v974_v34 }
 0x1f3   :  { %v1670_v50 = vmin.f32 %v1232_v20, %v1240_v44  ;;  %v1233_v31 = vsel %vm1105_vm11, %v2529_v60, 16.0  ;;  %v1241_v5 = vsel %vm1113_vm12, %v2531_v61, 16.0  ;;  %vm1106_vm13 = vcmp.eq.f32.partialorder %v3913_v26, %v981_v12 }
 0x1f4   :  { %vm1114_vm14 = vcmp.eq.f32.partialorder %v3966_v30, %v981_v12  ;;  %v1664_v57 = vrot.slane %v1663_v53, 4  ;;  %v1677_v42 = vmin.f32 %v1233_v31, %v1241_v5  ;;  %v1234_v21 = vsel %vm1106_vm13, %v2529_v60, 16.0  ;;  %v4278_v31 = vld [vmem:[#allocation21_spill] sm:$0xff] }
 0x1f5   :  { %v1671_v11 = vrot.slane %v1670_v50, 4  ;;  %v1242_v39 = vsel %vm1114_vm14, %v2531_v61, 16.0  ;;  %vm1784_vm15 = vcmp.eq.f32.partialorder %v2531_v61, %v4019_v7  ;;  %v1910_v10 = vsel %vm1782_vm5, 1.0, %v4241_v36 }
 0x1f6   :  { %v2047_v38 = vadd.f32 %v2046_v54, %v1909_v40  ;;  %vm1797_vm1 = vcmp.eq.f32.partialorder %v2531_v61, %v3125_v35  ;;  %v1665_v26 = vmin.f32 %v1663_v53, %v1664_v57  ;;  %v1678_v30 = vrot.slane %v1677_v42, 4 }
 0x1f7   :  { %v1684_v46 = vmin.f32 %v1234_v21, %v1242_v39  ;;  %v1911_v55 = vsel %vm1783_vm4, 1.0, %v4241_v36  ;;  %v1672_v45 = vmin.f32 %v1670_v50, %v1671_v11  ;;  %vm1785_vm2 = vcmp.eq.f32.partialorder %v2531_v61, %v4024_v58  ;;  %v4276_v50 = vld [vmem:[#allocation22_spill] sm:$0xff] }
 0x1f8   :  { %vm1786_vm3 = vcmp.eq.f32.partialorder %v2531_v61, %v4028_v49  ;;  %v2048_v28 = vadd.f32 %v2047_v38, %v1910_v10  ;;  %v4273_v2 = vrot.slane %v3232_v19, 1  ;;  %v1619_v51 = vrot.slane %v3996_v1, 1 }
 0x1f9   :  { %v1666_v22 = vrot.slane %v1665_v26, 2  ;;  %v1679_v29 = vmin.f32 %v1677_v42, %v1678_v30  ;;  %v1625_v37 = vmin.f32 %v3968_v14, %v1624_v27  ;;  %v1631_v25 = vrot.slane %v4000_v15, 2 }
 0x1fa   :  { %v4073_v43 = vmin.f32 %v3232_v19, %v4273_v2  ;;  %v1685_v48 = vrot.slane %v1684_v46, 4  ;;  %v2049_v8 = vadd.f32 %v2048_v28, %v1911_v55  ;;  %v4083_v23 = vmin.f32 %v3984_v9, %v1612_v32  ;;  %v4279_v28 = vld [vmem:[#allocation18_spill] sm:$0xff]  ;;  %v4280_v2 = vld [vmem:[#allocation20_spill] sm:$0xff] }
 0x1fb   :  { %v1912_v19 = vsel %vm1784_vm15, 1.0, %v4241_v36  ;;  %v1913_v18 = vsel %vm1785_vm2, 1.0, %v4241_v36  ;;  %v1914_v63 = vsel %vm1786_vm3, 1.0, %v4241_v36  ;;  %vm1789_vm5 = vcmp.eq.f32.partialorder %v2529_v60, %v3125_v35 }
 0x1fc   :  { %v1673_v14 = vrot.slane %v1672_v45, 2  ;;  %v2050_v27 = vadd.f32 %v2049_v8, %v1912_v19  ;;  %vm1774_vm4 = vcmp.eq.f32.partialorder %v2529_v60, %v4270_v0  ;;  %vm1775_vm6 = vcmp.eq.f32.partialorder %v2529_v60, %v3939_v33 }
 0x1fd   :  { %v1667_v9 = vmin.f32 %v1665_v26, %v1666_v22  ;;  %v1680_v32 = vrot.slane %v1679_v29, 2  ;;  %vm1776_vm7 = vcmp.eq.f32.partialorder %v2529_v60, %v4019_v7  ;;  %v1901_v13 = vsel %vm1773_vm10, 1.0, %v4241_v36  ;;  %v4277_v7 = vld [vmem:[#allocation19_spill] sm:$0xff] }
 0x1fe   :  { %v1686_v62 = vmin.f32 %v1684_v46, %v1685_v48  ;;  %v2051_v47 = vadd.f32 %v2050_v27, %v1913_v18  ;;  %v2037_v17 = vadd.f32 %v4275_v52, %v4274_v16  ;;  %v1626_v4 = vrot.slane %v1625_v37, 1 }
 0x1ff   :  { %vm1777_vm8 = vcmp.eq.f32.partialorder %v2529_v60, %v4024_v58  ;;  %vm1778_vm9 = vcmp.eq.f32.partialorder %v2529_v60, %v4028_v49  ;;  %v1902_v33 = vsel %vm1774_vm4, 1.0, %v4241_v36  ;;  %v1903_v0 = vsel %vm1775_vm6, 1.0, %v4241_v36 }
 0x200   :  { %v1674_v34 = vmin.f32 %v1672_v45, %v1673_v14  ;;  %v2052_v12 = vadd.f32 %v2051_v47, %v1914_v63  ;;  %v2038_v3 = vadd.f32 %v2037_v17, %v1901_v13  ;;  %v1632_v40 = vmin.f32 %v4000_v15, %v1631_v25  ;;  %v4282_v13 = vld [vmem:[#allocation26_spill] sm:$0xff] }
 0x201   :  { %vm1813_vm10 = vcmp.eq.f32.partialorder %v2531_v61, %v3229_v41  ;;  %v1668_v24 = vrot.slane %v1667_v9, 1  ;;  %v1681_v59 = vmin.f32 %v1679_v29, %v1680_v32  ;;  %v1904_v54 = vsel %vm1776_vm7, 1.0, %v4241_v36  ;;  %v4281_v32 = vld [vmem:[#allocation24_spill] sm:$0xff] }
 0x202   :  { %v1620_v6 = vmin.f32 %v3996_v1, %v1619_v51  ;;  %v1687_v56 = vrot.slane %v1686_v62, 2  ;;  %2053 = vadd.xlane.f32.xlu2 %v2052_v12  ;;  %v2039_v20 = vadd.f32 %v2038_v3, %v1902_v33  ;;  %v1627_v44 = vmin.f32 %v1625_v37, %v1626_v4 }
 0x203   :  { %v1925_v15 = vsel %vm1797_vm1, 1.0, %v4241_v36  ;;  %v1633_v53 = vrot.slane %v1632_v40, 1  ;;  %vm1798_vm11 = vcmp.eq.f32.partialorder %v2531_v61, %v4276_v50  ;;  %vm1799_vm12 = vcmp.eq.f32.partialorder %v2531_v61, %v4083_v23 }
 0x204   :  { %v2064_v5 = vadd.f32 %v4278_v31, %v4277_v7  ;;  %v1675_v1 = vrot.slane %v1674_v34, 1  ;;  %v1905_v57 = vsel %vm1777_vm8, 1.0, %v4241_v36  ;;  %v1906_v11 = vsel %vm1778_vm9, 1.0, %v4241_v36 }
 0x205   :  { %v2040_v42 = vadd.f32 %v2039_v20, %v1903_v0  ;;  %v4137_v21 = vmin.f32 %v1667_v9, %v1668_v24  ;;  %v1682_v39 = vrot.slane %v1681_v59, 1  ;;  %vm1800_vm13 = vcmp.eq.f32.partialorder %v2531_v61, %v1620_v6 }
 0x206   :  { %v2065_v10 = vadd.f32 %v2064_v5, %v1925_v15  ;;  %vm1801_vm14 = vcmp.eq.f32.partialorder %v2531_v61, %v1627_v44  ;;  %v1926_v26 = vsel %vm1798_vm11, 1.0, %v4241_v36  ;;  %v1927_v58 = vsel %vm1799_vm12, 1.0, %v4241_v36 }
 0x207   :  { %v2041_v38 = vadd.f32 %v2040_v42, %v1904_v54  ;;  %v1688_v30 = vmin.f32 %v1686_v62, %v1687_v56  ;;  %v1634_v46 = vmin.f32 %v1632_v40, %v1633_v53  ;;  %v1917_v49 = vsel %vm1789_vm5, 1.0, %v4241_v36  ;;  %v4284_v54 = vld [vmem:[#allocation25_spill] sm:$0xff] }
 0x208   :  { %v2066_v55 = vadd.f32 %v2065_v10, %v1926_v26  ;;  %vm1790_vm15 = vcmp.eq.f32.partialorder %v2529_v60, %v4276_v50  ;;  %vm1791_vm1 = vcmp.eq.f32.partialorder %v2529_v60, %v4083_v23  ;;  %v2055_v51 = vadd.f32 %v4280_v2, %v4279_v28 }
 0x209   :  { %v2042_v45 = vadd.f32 %v2041_v38, %v1905_v57  ;;  %v1676_v22 = vmin.f32 %v1674_v34, %v1675_v1  ;;  %v1928_v29 = vsel %vm1800_vm13, 1.0, %v4241_v36  ;;  %v1929_v37 = vsel %vm1801_vm14, 1.0, %v4241_v36 }
 0x20a   :  { %v2067_v25 = vadd.f32 %v2066_v55, %v1927_v58  ;;  %vm1792_vm2 = vcmp.eq.f32.partialorder %v2529_v60, %v1620_v6  ;;  %vm1793_vm3 = vcmp.eq.f32.partialorder %v2529_v60, %v1627_v44  ;;  %v2056_v35 = vadd.f32 %v2055_v51, %v1917_v49  ;;  %v1955_v58 = vpop.xlane.xlu0 %1954 }
 0x20b   :  { %v2043_v48 = vadd.f32 %v2042_v45, %v1906_v11  ;;  %vm1802_vm5 = vcmp.eq.f32.partialorder %v2531_v61, %v1634_v46  ;;  %v1918_v23 = vsel %vm1790_vm15, 1.0, %v4241_v36  ;;  %v1919_v19 = vsel %vm1791_vm1, 1.0, %v4241_v36 }
 0x20c   :  { %v2068_v8 = vadd.f32 %v2067_v25, %v1928_v29  ;;  %v2057_v18 = vadd.f32 %v2056_v35, %v1918_v23  ;;  %v1683_v63 = vmin.f32 %v1681_v59, %v1682_v39  ;;  %v1689_v14 = vrot.slane %v1688_v30, 1  ;;  %v4283_v59 = vld [vmem:[#allocation23_spill] sm:$0xff] }
 0x20d   :  { %2044 = vadd.xlane.f32.xlu1 %v2043_v48  ;;  %v1941_v27 = vsel %vm1813_vm10, 1.0, %v4241_v36  ;;  %vm1814_vm4 = vcmp.eq.f32.partialorder %v2531_v61, %v4073_v43  ;;  %vm1815_vm6 = vcmp.eq.f32.partialorder %v2531_v61, %v4137_v21  ;;  %v2082_v62 = vadd.f32 %v4282_v13, %v4281_v32 }
 0x20e   :  { %v2069_v9 = vadd.f32 %v2068_v8, %v1929_v37  ;;  %vm1805_vm7 = vcmp.eq.f32.partialorder %v2529_v60, %v3229_v41  ;;  %v1930_v47 = vsel %vm1802_vm5, 1.0, %v4241_v36  ;;  %vm1794_vm8 = vcmp.eq.f32.partialorder %v2529_v60, %v1634_v46 }
 0x20f   :  { %v2058_v16 = vadd.f32 %v2057_v18, %v1919_v19  ;;  %v1920_v52 = vsel %vm1792_vm2, 1.0, %v4241_v36  ;;  %v1921_v17 = vsel %vm1793_vm3, 1.0, %v4241_v36  ;;  %vm1816_vm9 = vcmp.eq.f32.partialorder %v2531_v61, %v1676_v22 }
 0x210   :  { %v2083_v4 = vadd.f32 %v2082_v62, %v1941_v27  ;;  %v2070_v33 = vadd.f32 %v2069_v9, %v1930_v47  ;;  %v1942_v41 = vsel %vm1814_vm4, 1.0, %v4241_v36  ;;  %v1943_v34 = vsel %vm1815_vm6, 1.0, %v4241_v36 }
 0x211   :  { %v2059_v0 = vadd.f32 %v2058_v16, %v1920_v52  ;;  %v1690_v12 = vmin.f32 %v1688_v30, %v1689_v14  ;;  %vm1817_vm10 = vcmp.eq.f32.partialorder %v2531_v61, %v1683_v63  ;;  %v1933_v40 = vsel %vm1805_vm7, 1.0, %v4241_v36  ;;  %v1973_v30 = vpop.xlane.xlu1 %1972 }
 0x212   :  { %v2084_v3 = vadd.f32 %v2083_v4, %v1942_v41  ;;  %vm1806_vm11 = vcmp.eq.f32.partialorder %v2529_v60, %v4073_v43  ;;  %vm1807_vm12 = vcmp.eq.f32.partialorder %v2529_v60, %v4137_v21  ;;  %v2073_v6 = vadd.f32 %v4284_v54, %v4283_v59  ;;  %v1964_v46 = vpop.xlane.xlu0 %1963 }
 0x213   :  { %v2060_v24 = vadd.f32 %v2059_v0, %v1921_v17  ;;  %v1922_v56 = vsel %vm1794_vm8, 1.0, %v4241_v36  ;;  %v1944_v15 = vsel %vm1816_vm9, 1.0, %v4241_v36  ;;  %v1945_v53 = vsel %vm1817_vm10, 1.0, %v4241_v36 }
 0x214   :  { %v2085_v20 = vadd.f32 %v2084_v3, %v1943_v34  ;;  %v2074_v43 = vadd.f32 %v2073_v6, %v1933_v40  ;;  %v1934_v7 = vsel %vm1806_vm11, 1.0, %v4241_v36  ;;  %v1935_v31 = vsel %vm1807_vm12, 1.0, %v4241_v36 }
 0x215   :  { %2071 = vadd.xlane.f32.xlu1 %v2070_v33  ;;  %v2061_v44 = vadd.f32 %v2060_v24, %v1922_v56  ;;  %vm1818_vm13 = vcmp.eq.f32.partialorder %v2531_v61, %v1690_v12  ;;  %vm1808_vm14 = vcmp.eq.f32.partialorder %v2529_v60, %v1676_v22  ;;  %vm1809_vm15 = vcmp.eq.f32.partialorder %v2529_v60, %v1683_v63 }
 0x216   :  { %v2086_v50 = vadd.f32 %v2085_v20, %v1944_v15  ;;  %v2075_v5 = vadd.f32 %v2074_v43, %v1934_v7  ;;  %v1946_v11 = vsel %vm1818_vm13, 1.0, %v4241_v36  ;;  %v1936_v42 = vsel %vm1808_vm14, 1.0, %v4241_v36 }
 0x217   :  { %2062 = vadd.xlane.f32.xlu0 %v2061_v44  ;;  %v1937_v21 = vsel %vm1809_vm15, 1.0, %v4241_v36  ;;  %vm1810_vm1 = vcmp.eq.f32.partialorder %v2529_v60, %v1690_v12  ;;  %v4285_v37 = vlaneseq  ;;  %vm2112_vm2 = vcmask 130112  }
 0x218   :  { %v2087_v1 = vadd.f32 %v2086_v50, %v1945_v53  ;;  %v2076_v57 = vadd.f32 %v2075_v5, %v1935_v31  ;;  %v1938_v61 = vsel %vm1810_vm1, 1.0, %v4241_v36  ;;  %vm2135_vm3 = vcmask 1041409  }
 0x219   :  { %v1982_v49 = vpop.xlane.xlu1 %1981  ;;  %v2108_v60 = vand.u32 127, %v4285_v37  ;;  %vm2137_vm5 = vcmask 1042434   ;;  %vm2139_vm4 = vcmask 1043459   ;;  %vm2141_vm6 = vcmask 1044484  }
 0x21a   :  { %v2088_v39 = vadd.f32 %v2087_v1, %v1946_v11  ;;  %v2077_v10 = vadd.f32 %v2076_v57, %v1936_v42  ;;  %vm2143_vm7 = vcmask 1045509   ;;  %vm2145_vm8 = vcmask 1046534  }
 0x21b   :  { %v2110_v25 = vadd.s32 4294967288, %v2108_v60  ;;  %v2114_v19 = vperm.slane %v1973_v30, %v2108_v60  ;;  %v2109_v13 = vperm.slane %v1955_v58, %v2108_v60  ;;  %vm2147_vm9 = vcmask 1047559  }
 0x21c   :  { %v2078_v38 = vadd.f32 %v2077_v10, %v1937_v21 }
 0x21d   :  { %v2115_v35 = vperm.slane %v1982_v49, %v2110_v25  ;;  %v2111_v23 = vperm.slane %v1964_v46, %v2110_v25 }
 0x21e   :  { %v2079_v26 = vadd.f32 %v2078_v38, %v1938_v61 }
 0x21f   :  { %2089 = vadd.xlane.f32.xlu0 %v2088_v39  ;;  %v2116_v62 = vsel %vm2112_vm2, %v2115_v35, %v2114_v19  ;;  %v2113_v33 = vsel %vm2112_vm2, %v2111_v23, %v2109_v13 }
 0x220   :  { %2080 = vadd.xlane.f32.xlu2 %v2079_v26  ;;  %v2136_v41 = vsel %vm2135_vm3, %v2116_v62, %v2113_v33 }
 0x223   :  { %v1991_v55 = vpop.xlane.xlu2 %1990 }
 0x224   :  { %v2117_v27 = vperm.slane %v1991_v55, %v2108_v60 }
 0x22f   :  { %v2000_v28 = vpop.xlane.xlu2 %1999 }
 0x230   :  { %v2118_v36 = vperm.slane %v2000_v28, %v2110_v25 }
 0x232   :  { %v2119_v52 = vsel %vm2112_vm2, %v2118_v36, %v2117_v27 }
 0x233   :  { %v2138_v3 = vsel %vm2137_vm5, %v2119_v52, %v2136_v41 }
 0x241   :  { %v2018_v2 = vpop.xlane.xlu1 %2017 }
 0x242   :  { %v2121_v18 = vperm.slane %v2018_v2, %v2110_v25 }
 0x247   :  { %v2009_v45 = vpop.xlane.xlu0 %2008 }
 0x248   :  { %v2120_v63 = vperm.slane %v2009_v45, %v2108_v60 }
 0x24a   :  { %v2122_v0 = vsel %vm2112_vm2, %v2121_v18, %v2120_v63 }
 0x24b   :  { %v2140_v59 = vsel %vm2139_vm4, %v2122_v0, %v2138_v3 }
 0x259   :  { %v2036_v51 = vpop.xlane.xlu0 %2035 }
 0x25a   :  { %v2124_v9 = vperm.slane %v2036_v51, %v2110_v25 }
 0x263   :  { %v2027_v22 = vpop.xlane.xlu2 %2026 }
 0x264   :  { %v2123_v32 = vperm.slane %v2027_v22, %v2108_v60 }
 0x266   :  { %v2125_v34 = vsel %vm2112_vm2, %v2124_v9, %v2123_v32 }
 0x267   :  { %v2142_v56 = vsel %vm2141_vm6, %v2125_v34, %v2140_v59 }
 0x275   :  { %v2054_v8 = vpop.xlane.xlu2 %2053 }
 0x276   :  { %v2127_v47 = vperm.slane %v2054_v8, %v2110_v25 }
 0x280   :  { %v2045_v29 = vpop.xlane.xlu1 %2044 }
 0x281   :  { %v2126_v16 = vperm.slane %v2045_v29, %v2108_v60 }
 0x283   :  { %v2128_v40 = vsel %vm2112_vm2, %v2127_v47, %v2126_v16 }
 0x284   :  { %v2144_v44 = vsel %vm2143_vm7, %v2128_v40, %v2142_v56 }
 0x288   :  { %v2072_v14 = vpop.xlane.xlu1 %2071 }
 0x289   :  { %v2130_v17 = vperm.slane %v2072_v14, %v2110_v25 }
 0x28a   :  { %v2063_v48 = vpop.xlane.xlu0 %2062 }
 0x28b   :  { %v2129_v4 = vperm.slane %v2063_v48, %v2108_v60 }
 0x28d   :  { %v2131_v54 = vsel %vm2112_vm2, %v2130_v17, %v2129_v4 }
 0x28e   :  { %v2146_v53 = vsel %vm2145_vm8, %v2131_v54, %v2144_v44 }
 0x292   :  { %v2090_v12 = vpop.xlane.xlu0 %2089 }
 0x293   :  { %v2133_v24 = vperm.slane %v2090_v12, %v2110_v25  ;;  %v2081_v6 = vpop.xlane.xlu2 %2080 }
 0x294   :  { %v2132_v20 = vperm.slane %v2081_v6, %v2108_v60 }
 0x296   :  { %v2134_v15 = vsel %vm2112_vm2, %v2133_v24, %v2132_v20 }
 0x297   :  { %v2148_v43 = vsel %vm2147_vm9, %v2134_v15, %v2146_v53 }
 0x298   :  { %2150 = vst.msk [vmem:[#allocation2] sm:$0xff] %vm117_vm0, %v2148_v43 }
 0x299   :  { %2161 = dma.vmem_to_hbm [thread:$0]  %s2157_s28, 128, %s2159_s3, [#allocation3]  }
 0x29a   :  { %2337 = dma.done.wait [#allocation3], 128  }
 0x29b   :  { %2338 = vsyncadd [#allocation3], 4294967168 }
 0x29c   :  { %2166 = vsyncpa [#allocation3], 1 }

</bundles_post_ra>
